<compile_context>
chip_gen: v7x
topology: tpu7x:2x2x1
jax: 0.10.0
libtpu: 0.0.40
codegen_flags: <defaults>
</compile_context>

<pallas_src>
import functools

import jax
import jax.numpy as jnp
from jax import lax
from jax.experimental import pallas as pl
from jax.experimental.pallas import tpu as pltpu

NEG_SLOPE = 0.2   # activate = 'leaky_relu', negative_slope = 0.2
_LANE = 128


def _round_up(v, m=_LANE):
    return ((v + m - 1) // m) * m


def _full_spec(shape):
    # whole-array block, empty grid (single kernel invocation)
    return pl.BlockSpec(shape, lambda: tuple(0 for _ in shape))


def _vmem_limit_bytes():
    """Generation-aware VMEM limit (~75% of physical), safe 32 MiB fallback."""
    try:
        cap = int(pltpu.get_tpu_info().vmem_capacity_bytes)
        return max(32 * 1024 * 1024, (cap * 3) // 4)
    except Exception:
        return 32 * 1024 * 1024


# ----------------------------------------------------------------------------
# Single fused Pallas kernel: Coarsen -> Refine -> classifier
# ----------------------------------------------------------------------------
def fused_forward_kernel(*refs, coarse_layers, num_layers, cluster_counts):
    # ---- unpack refs (inputs..., out_ref) --------------------------------
    idx = 0
    a_ref = refs[idx]; idx += 1      # bf16 [N,N] raw symmetric adjacency + self loops
    rs_ref = refs[idx]; idx += 1     # f32  [N,1] rsqrt(degree)
    x_ref = refs[idx]; idx += 1      # bf16 [N,F] node features
    coarsen_ws = []
    for _lvl in range(coarse_layers):
        coarsen_ws.append([refs[idx + j] for j in range(num_layers)])
        idx += num_layers
    assign_ws = [refs[idx + i] for i in range(coarse_layers)]; idx += coarse_layers
    refine_ws = [refs[idx + i] for i in range(coarse_layers)]; idx += coarse_layers
    cls_w_ref = refs[idx]; idx += 1  # bf16 [HID_PAD, CLS_PAD]
    cls_b_ref = refs[idx]; idx += 1  # f32  [1, CLS_PAD]
    out_ref = refs[idx]; idx += 1    # f32  [N, CLS_PAD]

    f32, bf16 = jnp.float32, jnp.bfloat16

    def mm(a_bf, b_bf):
        # both operands are already bf16 (hoisted casts); f32 accumulation
        return jnp.dot(a_bf, b_bf, preferred_element_type=f32)

    def mm_t0(a_bf, b_bf):
        # a^T @ b without materializing the transpose: contract axis 0 of both
        return lax.dot_general(a_bf, b_bf,
                               dimension_numbers=(((0,), (0,)), ((), ())),
                               preferred_element_type=f32)

    def leaky(x):  # f32 epilogue
        return jnp.where(x > 0, x, NEG_SLOPE * x)

    def softmax_masked(logits, n_valid):
        # mask padded cluster columns before softmax; exact reciprocal
        col = lax.broadcasted_iota(jnp.int32, logits.shape, 1)
        logits = jnp.where(col < n_valid, logits, jnp.float32(-1e30))
        m = jnp.max(logits, axis=-1, keepdims=True)
        e = jnp.exp(logits - m)
        return e / jnp.sum(e, axis=-1, keepdims=True)

    # Single resident N x N tensor: the raw bf16 adjacency.  Normalization
    # D^-1/2 (A+I) D^-1/2 is folded into the skinny operands via rs = rsqrt(deg):
    #   A_hat @ Y == rs * (A @ (rs * Y))
    a0 = a_ref[...]          # bf16, loaded once, reused by every level-0 matmul
    rs = rs_ref[...]         # f32 [N,1]

    # ---------------- Coarsen ----------------
    h_bf = x_ref[...]        # bf16 features
    x_list, a_list, s_list = [], [], []
    a_cur_bf = None
    for lvl in range(coarse_layers):
        for layer in range(num_layers):
            hw = mm(h_bf, coarsen_ws[lvl][layer][...])            # H @ W (f32)
            if lvl == 0:
                h = leaky(mm(a0, (hw * rs).astype(bf16)) * rs)    # A_hat @ HW folded
            else:
                h = leaky(mm(a_cur_bf, hw.astype(bf16)))
            h_bf = h.astype(bf16)                                 # cast once, reuse
        x_list.append(h_bf)                                       # bf16 residual

        # soft cluster assignment S = softmax(H @ Wa)  (pad columns masked)
        s = softmax_masked(mm(h_bf, assign_ws[lvl][...]), cluster_counts[lvl])
        s_bf = s.astype(bf16)
        s_list.append(s_bf)

        # pooling: X_coarse = S^T H ; A_coarse = S^T A_hat S
        h_bf = mm_t0(s_bf, h_bf).astype(bf16)
        if lvl == 0:
            a_list.append(None)                                   # level 0 uses (a0, rs)
            s_rs_bf = (s * rs).astype(bf16)                       # fold D^-1/2 into S
            a_cur = mm_t0(s_rs_bf, mm(a0, s_rs_bf).astype(bf16))  # (rs*S)^T A (rs*S)
        else:
            a_list.append(a_cur_bf)
            a_cur = mm_t0(s_bf, mm(a_cur_bf, s_bf).astype(bf16))
        a_cur_bf = a_cur.astype(bf16)

    # ---------------- Refine ----------------
    xc_bf = h_bf
    for lvl in reversed(range(coarse_layers)):
        x_up = mm(s_list[lvl], xc_bf) + x_list[lvl].astype(f32)   # unpool + skip
        hw = mm(x_up.astype(bf16), refine_ws[lvl][...])
        if lvl == 0:
            xc = leaky(mm(a0, (hw * rs).astype(bf16)) * rs)       # A_hat conv, folded
        else:
            xc = leaky(mm(a_list[lvl], hw.astype(bf16)))
        xc_bf = xc.astype(bf16)

    # ---------------- classifier (lane-dense padded store) ----------------
    out = mm(xc_bf, cls_w_ref[...]) + cls_b_ref[...]
    out_ref[...] = out.astype(out_ref.dtype)


# ----------------------------------------------------------------------------
# Glue (plain JAX): adjacency scatter, parameter init, model driver
# ----------------------------------------------------------------------------
def raw_adjacency_bf16(edge_index, n):
    """Symmetric 0/1 bf16 adjacency with self loops via ONE scatter, + rsqrt(deg)."""
    src, dst = edge_index[0], edge_index[1]
    diag = jnp.arange(n, dtype=edge_index.dtype)
    rows = jnp.concatenate([src, dst, diag])
    cols = jnp.concatenate([dst, src, diag])
    a = jnp.zeros((n, n), jnp.bfloat16).at[rows, cols].set(1.0)
    # degree sum in f32 (values are 0/1, exact); self loops => deg >= 1, rsqrt safe
    deg = jnp.sum(a, axis=1, dtype=jnp.float32, keepdims=True)
    return a, lax.rsqrt(deg)


def init_params(key, num_features, hidden, num_classes, coarse_layers, num_layers,
                cluster_sizes):
    def glorot(k, shape):
        fan_in, fan_out = shape
        lim = jnp.sqrt(6.0 / (fan_in + fan_out))
        return jax.random.uniform(k, shape, jnp.float32, -lim, lim)

    params = {"coarsen_gnn": [], "assign": [], "refine_gnn": []}
    for lvl in range(coarse_layers):
        lvl_ws = []
        for layer in range(num_layers):
            f_in = num_features if (lvl == 0 and layer == 0) else hidden
            key, k = jax.random.split(key)
            lvl_ws.append(glorot(k, (f_in, hidden)))
        params["coarsen_gnn"].append(lvl_ws)
        key, k = jax.random.split(key)
        params["assign"].append(glorot(k, (hidden, cluster_sizes[lvl + 1])))
        key, k = jax.random.split(key)
        params["refine_gnn"].append(glorot(k, (hidden, hidden)))
    key, k1, k2 = jax.random.split(key, 3)
    params["cls_w"] = glorot(k1, (hidden, num_classes))
    params["cls_b"] = jax.random.normal(k2, (1, num_classes), jnp.float32) * 0.01
    return params


def _pad2(w, rows, cols, dtype):
    return jnp.pad(w, ((0, rows - w.shape[0]), (0, cols - w.shape[1]))).astype(dtype)


def my_model_forward(params, x, edge_index, coarse_layers, num_layers, num_classes):
    n, _num_features = x.shape
    hidden = params["cls_w"].shape[0]
    hp = _round_up(hidden)
    cls_pad = _round_up(num_classes)
    cluster_counts = tuple(int(params["assign"][lvl].shape[1])
                           for lvl in range(coarse_layers))

    a, rsqrt_deg = raw_adjacency_bf16(edge_index, n)

    bf16 = jnp.bfloat16
    flat_inputs = [a, rsqrt_deg, x.astype(bf16)]
    for lvl in range(coarse_layers):
        for layer in range(num_layers):
            w = params["coarsen_gnn"][lvl][layer]
            rows = w.shape[0] if (lvl == 0 and layer == 0) else hp
            flat_inputs.append(_pad2(w, rows, hp, bf16))
    for lvl in range(coarse_layers):
        flat_inputs.append(_pad2(params["assign"][lvl], hp,
                                 _round_up(cluster_counts[lvl]), bf16))
    for lvl in range(coarse_layers):
        flat_inputs.append(_pad2(params["refine_gnn"][lvl], hp, hp, bf16))
    flat_inputs.append(_pad2(params["cls_w"], hp, cls_pad, bf16))
    flat_inputs.append(jnp.pad(params["cls_b"],
                               ((0, 0), (0, cls_pad - num_classes))))  # stays f32

    out_padded = pl.pallas_call(
        functools.partial(fused_forward_kernel,
                          coarse_layers=coarse_layers,
                          num_layers=num_layers,
                          cluster_counts=cluster_counts),
        out_shape=jax.ShapeDtypeStruct((n, cls_pad), jnp.float32),
        in_specs=[_full_spec(t.shape) for t in flat_inputs],
        out_specs=_full_spec((n, cls_pad)),
        compiler_params=pltpu.CompilerParams(vmem_limit_bytes=_vmem_limit_bytes()),
    )(*flat_inputs)

    return out_padded[:, :num_classes]


if __name__ == "__main__":
    # small, deterministic config
    NUM_NODES = 64
    NUM_EDGES = 256
    NUM_FEATURES = 16
    HIDDEN = 32
    NUM_CLASSES = 8
    COARSE_LAYERS = 2
    NUM_LAYERS = 2
    CLUSTER_SIZES = [NUM_NODES, 32, 16]  # N -> N/2 -> N/4

    key = jax.random.PRNGKey(0)
    key, kx, ke, kp = jax.random.split(key, 4)
    x = jax.random.normal(kx, (NUM_NODES, NUM_FEATURES), jnp.float32)
    edge_index = jax.random.randint(ke, (2, NUM_EDGES), 0, NUM_NODES, jnp.int32)

    params = init_params(kp, NUM_FEATURES, HIDDEN, NUM_CLASSES,
                         COARSE_LAYERS, NUM_LAYERS, CLUSTER_SIZES)

    fwd = jax.jit(functools.partial(my_model_forward,
                                    coarse_layers=COARSE_LAYERS,
                                    num_layers=NUM_LAYERS,
                                    num_classes=NUM_CLASSES))
    out = fwd(params, x, edge_index)
    jax.block_until_ready(out)
    assert out.shape == (NUM_NODES, NUM_CLASSES)
    assert bool(jnp.all(jnp.isfinite(out)))
    print("KERNEL_OK")
</pallas_src>

<mosaic_0001>
module attributes {stable_mosaic.version = 11 : i64} {
  func.func @fused_forward_kernel(%arg0: memref<64x64xbf16, #tpu.memory_space<vmem>>, %arg1: memref<64x1xf32, #tpu.memory_space<vmem>>, %arg2: memref<64x16xbf16, #tpu.memory_space<vmem>>, %arg3: memref<16x128xbf16, #tpu.memory_space<vmem>>, %arg4: memref<128x128xbf16, #tpu.memory_space<vmem>>, %arg5: memref<128x128xbf16, #tpu.memory_space<vmem>>, %arg6: memref<128x128xbf16, #tpu.memory_space<vmem>>, %arg7: memref<128x128xbf16, #tpu.memory_space<vmem>>, %arg8: memref<128x128xbf16, #tpu.memory_space<vmem>>, %arg9: memref<128x128xbf16, #tpu.memory_space<vmem>>, %arg10: memref<128x128xbf16, #tpu.memory_space<vmem>>, %arg11: memref<128x128xbf16, #tpu.memory_space<vmem>>, %arg12: memref<1x128xf32, #tpu.memory_space<vmem>>, %arg13: memref<64x128xf32, #tpu.memory_space<vmem>>) attributes {dimension_semantics = [], scalar_prefetch = 0 : i64, scratch_operands = 0 : i64, tpu.core_type = #tpu.core_type<tc>} {
    %c0 = arith.constant 0 : index
    %c0_0 = arith.constant 0 : index
    %0 = vector.load %arg0[%c0, %c0_0] : memref<64x64xbf16, #tpu.memory_space<vmem>>, vector<64x64xbf16>
    %c0_1 = arith.constant 0 : index
    %c0_2 = arith.constant 0 : index
    %1 = vector.load %arg1[%c0_1, %c0_2] : memref<64x1xf32, #tpu.memory_space<vmem>>, vector<64x1xf32>
    %c0_3 = arith.constant 0 : index
    %c0_4 = arith.constant 0 : index
    %2 = vector.load %arg2[%c0_3, %c0_4] : memref<64x16xbf16, #tpu.memory_space<vmem>>, vector<64x16xbf16>
    %c0_5 = arith.constant 0 : index
    %c0_6 = arith.constant 0 : index
    %3 = vector.load %arg3[%c0_5, %c0_6] : memref<16x128xbf16, #tpu.memory_space<vmem>>, vector<16x128xbf16>
    %cst = arith.constant dense<0.000000e+00> : vector<64x128xf32>
    %4 = tpu.matmul %2, %3, %cst {dimension_numbers = #tpu.dot_dimension_numbers<[1], [0], [0], [1], [0, 0, 1, 1], [], []>} : vector<64x16xbf16>, vector<16x128xbf16>, vector<64x128xf32> -> vector<64x128xf32>
    %5 = vector.broadcast %1 : vector<64x1xf32> to vector<64x128xf32>
    %6 = arith.mulf %4, %5 : vector<64x128xf32>
    %7 = arith.truncf %6 : vector<64x128xf32> to vector<64x128xbf16>
    %cst_7 = arith.constant dense<0.000000e+00> : vector<64x128xf32>
    %8 = tpu.matmul %0, %7, %cst_7 {dimension_numbers = #tpu.dot_dimension_numbers<[1], [0], [0], [1], [0, 0, 1, 1], [], []>} : vector<64x64xbf16>, vector<64x128xbf16>, vector<64x128xf32> -> vector<64x128xf32>
    %9 = vector.broadcast %1 : vector<64x1xf32> to vector<64x128xf32>
    %10 = arith.mulf %8, %9 : vector<64x128xf32>
    %cst_8 = arith.constant 0.000000e+00 : f32
    %11 = vector.broadcast %cst_8 : f32 to vector<64x128xf32>
    %12 = arith.cmpf ogt, %10, %11 : vector<64x128xf32>
    %cst_9 = arith.constant 2.000000e-01 : f32
    %13 = vector.broadcast %cst_9 : f32 to vector<64x128xf32>
    %14 = arith.mulf %13, %10 : vector<64x128xf32>
    %15 = arith.select %12, %10, %14 : vector<64x128xi1>, vector<64x128xf32>
    %16 = arith.truncf %15 : vector<64x128xf32> to vector<64x128xbf16>
    %c0_10 = arith.constant 0 : index
    %c0_11 = arith.constant 0 : index
    %17 = vector.load %arg4[%c0_10, %c0_11] : memref<128x128xbf16, #tpu.memory_space<vmem>>, vector<128x128xbf16>
    %cst_12 = arith.constant dense<0.000000e+00> : vector<64x128xf32>
    %18 = tpu.matmul %16, %17, %cst_12 {dimension_numbers = #tpu.dot_dimension_numbers<[1], [0], [0], [1], [0, 0, 1, 1], [], []>} : vector<64x128xbf16>, vector<128x128xbf16>, vector<64x128xf32> -> vector<64x128xf32>
    %19 = vector.broadcast %1 : vector<64x1xf32> to vector<64x128xf32>
    %20 = arith.mulf %18, %19 : vector<64x128xf32>
    %21 = arith.truncf %20 : vector<64x128xf32> to vector<64x128xbf16>
    %cst_13 = arith.constant dense<0.000000e+00> : vector<64x128xf32>
    %22 = tpu.matmul %0, %21, %cst_13 {dimension_numbers = #tpu.dot_dimension_numbers<[1], [0], [0], [1], [0, 0, 1, 1], [], []>} : vector<64x64xbf16>, vector<64x128xbf16>, vector<64x128xf32> -> vector<64x128xf32>
    %23 = vector.broadcast %1 : vector<64x1xf32> to vector<64x128xf32>
    %24 = arith.mulf %22, %23 : vector<64x128xf32>
    %cst_14 = arith.constant 0.000000e+00 : f32
    %25 = vector.broadcast %cst_14 : f32 to vector<64x128xf32>
    %26 = arith.cmpf ogt, %24, %25 : vector<64x128xf32>
    %cst_15 = arith.constant 2.000000e-01 : f32
    %27 = vector.broadcast %cst_15 : f32 to vector<64x128xf32>
    %28 = arith.mulf %27, %24 : vector<64x128xf32>
    %29 = arith.select %26, %24, %28 : vector<64x128xi1>, vector<64x128xf32>
    %30 = arith.truncf %29 : vector<64x128xf32> to vector<64x128xbf16>
    %c0_16 = arith.constant 0 : index
    %c0_17 = arith.constant 0 : index
    %31 = vector.load %arg7[%c0_16, %c0_17] : memref<128x128xbf16, #tpu.memory_space<vmem>>, vector<128x128xbf16>
    %cst_18 = arith.constant dense<0.000000e+00> : vector<64x128xf32>
    %32 = tpu.matmul %30, %31, %cst_18 {dimension_numbers = #tpu.dot_dimension_numbers<[1], [0], [0], [1], [0, 0, 1, 1], [], []>} : vector<64x128xbf16>, vector<128x128xbf16>, vector<64x128xf32> -> vector<64x128xf32>
    %33 = tpu.iota {dimensions = array<i32: 1>} : vector<64x128xi32>
    %c32_i32 = arith.constant 32 : i32
    %34 = vector.broadcast %c32_i32 : i32 to vector<64x128xi32>
    %35 = arith.cmpi slt, %33, %34 : vector<64x128xi32>
    %cst_19 = arith.constant -1.000000e+30 : f32
    %36 = vector.broadcast %cst_19 : f32 to vector<64x128xf32>
    %37 = arith.select %35, %32, %36 : vector<64x128xi1>, vector<64x128xf32>
    %cst_20 = arith.constant dense<0xFF800000> : vector<64xf32>
    %38 = vector.multi_reduction <maximumf>, %37, %cst_20 [1] : vector<64x128xf32> to vector<64xf32>
    %39 = vector.shape_cast %38 : vector<64xf32> to vector<64x1xf32>
    %40 = vector.broadcast %39 : vector<64x1xf32> to vector<64x128xf32>
    %41 = arith.subf %37, %40 : vector<64x128xf32>
    %42 = math.exp %41 : vector<64x128xf32>
    %cst_21 = arith.constant dense<0.000000e+00> : vector<64xf32>
    %43 = vector.multi_reduction <add>, %42, %cst_21 [1] : vector<64x128xf32> to vector<64xf32>
    %44 = vector.shape_cast %43 : vector<64xf32> to vector<64x1xf32>
    %45 = vector.broadcast %44 : vector<64x1xf32> to vector<64x128xf32>
    %46 = arith.divf %42, %45 : vector<64x128xf32>
    %47 = arith.truncf %46 : vector<64x128xf32> to vector<64x128xbf16>
    %cst_22 = arith.constant dense<0.000000e+00> : vector<128x128xf32>
    %48 = tpu.matmul %47, %30, %cst_22 {dimension_numbers = #tpu.dot_dimension_numbers<[0], [0], [1], [1], [0, 1, 1, 1], [], []>} : vector<64x128xbf16>, vector<64x128xbf16>, vector<128x128xf32> -> vector<128x128xf32>
    %49 = arith.truncf %48 : vector<128x128xf32> to vector<128x128xbf16>
    %50 = vector.broadcast %1 : vector<64x1xf32> to vector<64x128xf32>
    %51 = arith.mulf %46, %50 : vector<64x128xf32>
    %52 = arith.truncf %51 : vector<64x128xf32> to vector<64x128xbf16>
    %cst_23 = arith.constant dense<0.000000e+00> : vector<64x128xf32>
    %53 = tpu.matmul %0, %52, %cst_23 {dimension_numbers = #tpu.dot_dimension_numbers<[1], [0], [0], [1], [0, 0, 1, 1], [], []>} : vector<64x64xbf16>, vector<64x128xbf16>, vector<64x128xf32> -> vector<64x128xf32>
    %54 = arith.truncf %53 : vector<64x128xf32> to vector<64x128xbf16>
    %cst_24 = arith.constant dense<0.000000e+00> : vector<128x128xf32>
    %55 = tpu.matmul %52, %54, %cst_24 {dimension_numbers = #tpu.dot_dimension_numbers<[0], [0], [1], [1], [0, 1, 1, 1], [], []>} : vector<64x128xbf16>, vector<64x128xbf16>, vector<128x128xf32> -> vector<128x128xf32>
    %56 = arith.truncf %55 : vector<128x128xf32> to vector<128x128xbf16>
    %c0_25 = arith.constant 0 : index
    %c0_26 = arith.constant 0 : index
    %57 = vector.load %arg5[%c0_25, %c0_26] : memref<128x128xbf16, #tpu.memory_space<vmem>>, vector<128x128xbf16>
    %cst_27 = arith.constant dense<0.000000e+00> : vector<128x128xf32>
    %58 = tpu.matmul %49, %57, %cst_27 {dimension_numbers = #tpu.dot_dimension_numbers<[1], [0], [0], [1], [0, 0, 1, 1], [], []>} : vector<128x128xbf16>, vector<128x128xbf16>, vector<128x128xf32> -> vector<128x128xf32>
    %59 = arith.truncf %58 : vector<128x128xf32> to vector<128x128xbf16>
    %cst_28 = arith.constant dense<0.000000e+00> : vector<128x128xf32>
    %60 = tpu.matmul %56, %59, %cst_28 {dimension_numbers = #tpu.dot_dimension_numbers<[1], [0], [0], [1], [0, 0, 1, 1], [], []>} : vector<128x128xbf16>, vector<128x128xbf16>, vector<128x128xf32> -> vector<128x128xf32>
    %cst_29 = arith.constant 0.000000e+00 : f32
    %61 = vector.broadcast %cst_29 : f32 to vector<128x128xf32>
    %62 = arith.cmpf ogt, %60, %61 : vector<128x128xf32>
    %cst_30 = arith.constant 2.000000e-01 : f32
    %63 = vector.broadcast %cst_30 : f32 to vector<128x128xf32>
    %64 = arith.mulf %63, %60 : vector<128x128xf32>
    %65 = arith.select %62, %60, %64 : vector<128x128xi1>, vector<128x128xf32>
    %66 = arith.truncf %65 : vector<128x128xf32> to vector<128x128xbf16>
    %c0_31 = arith.constant 0 : index
    %c0_32 = arith.constant 0 : index
    %67 = vector.load %arg6[%c0_31, %c0_32] : memref<128x128xbf16, #tpu.memory_space<vmem>>, vector<128x128xbf16>
    %cst_33 = arith.constant dense<0.000000e+00> : vector<128x128xf32>
    %68 = tpu.matmul %66, %67, %cst_33 {dimension_numbers = #tpu.dot_dimension_numbers<[1], [0], [0], [1], [0, 0, 1, 1], [], []>} : vector<128x128xbf16>, vector<128x128xbf16>, vector<128x128xf32> -> vector<128x128xf32>
    %69 = arith.truncf %68 : vector<128x128xf32> to vector<128x128xbf16>
    %cst_34 = arith.constant dense<0.000000e+00> : vector<128x128xf32>
    %70 = tpu.matmul %56, %69, %cst_34 {dimension_numbers = #tpu.dot_dimension_numbers<[1], [0], [0], [1], [0, 0, 1, 1], [], []>} : vector<128x128xbf16>, vector<128x128xbf16>, vector<128x128xf32> -> vector<128x128xf32>
    %cst_35 = arith.constant 0.000000e+00 : f32
    %71 = vector.broadcast %cst_35 : f32 to vector<128x128xf32>
    %72 = arith.cmpf ogt, %70, %71 : vector<128x128xf32>
    %cst_36 = arith.constant 2.000000e-01 : f32
    %73 = vector.broadcast %cst_36 : f32 to vector<128x128xf32>
    %74 = arith.mulf %73, %70 : vector<128x128xf32>
    %75 = arith.select %72, %70, %74 : vector<128x128xi1>, vector<128x128xf32>
    %76 = arith.truncf %75 : vector<128x128xf32> to vector<128x128xbf16>
    %c0_37 = arith.constant 0 : index
    %c0_38 = arith.constant 0 : index
    %77 = vector.load %arg8[%c0_37, %c0_38] : memref<128x128xbf16, #tpu.memory_space<vmem>>, vector<128x128xbf16>
    %cst_39 = arith.constant dense<0.000000e+00> : vector<128x128xf32>
    %78 = tpu.matmul %76, %77, %cst_39 {dimension_numbers = #tpu.dot_dimension_numbers<[1], [0], [0], [1], [0, 0, 1, 1], [], []>} : vector<128x128xbf16>, vector<128x128xbf16>, vector<128x128xf32> -> vector<128x128xf32>
    %79 = tpu.iota {dimensions = array<i32: 1>} : vector<128x128xi32>
    %c16_i32 = arith.constant 16 : i32
    %80 = vector.broadcast %c16_i32 : i32 to vector<128x128xi32>
    %81 = arith.cmpi slt, %79, %80 : vector<128x128xi32>
    %cst_40 = arith.constant -1.000000e+30 : f32
    %82 = vector.broadcast %cst_40 : f32 to vector<128x128xf32>
    %83 = arith.select %81, %78, %82 : vector<128x128xi1>, vector<128x128xf32>
    %cst_41 = arith.constant dense<0xFF800000> : vector<128xf32>
    %84 = vector.multi_reduction <maximumf>, %83, %cst_41 [1] : vector<128x128xf32> to vector<128xf32>
    %85 = vector.shape_cast %84 : vector<128xf32> to vector<128x1xf32>
    %86 = vector.broadcast %85 : vector<128x1xf32> to vector<128x128xf32>
    %87 = arith.subf %83, %86 : vector<128x128xf32>
    %88 = math.exp %87 : vector<128x128xf32>
    %cst_42 = arith.constant dense<0.000000e+00> : vector<128xf32>
    %89 = vector.multi_reduction <add>, %88, %cst_42 [1] : vector<128x128xf32> to vector<128xf32>
    %90 = vector.shape_cast %89 : vector<128xf32> to vector<128x1xf32>
    %91 = vector.broadcast %90 : vector<128x1xf32> to vector<128x128xf32>
    %92 = arith.divf %88, %91 : vector<128x128xf32>
    %93 = arith.truncf %92 : vector<128x128xf32> to vector<128x128xbf16>
    %cst_43 = arith.constant dense<0.000000e+00> : vector<128x128xf32>
    %94 = tpu.matmul %93, %76, %cst_43 {dimension_numbers = #tpu.dot_dimension_numbers<[0], [0], [1], [1], [0, 1, 1, 1], [], []>} : vector<128x128xbf16>, vector<128x128xbf16>, vector<128x128xf32> -> vector<128x128xf32>
    %95 = arith.truncf %94 : vector<128x128xf32> to vector<128x128xbf16>
    %cst_44 = arith.constant dense<0.000000e+00> : vector<128x128xf32>
    %96 = tpu.matmul %93, %95, %cst_44 {dimension_numbers = #tpu.dot_dimension_numbers<[1], [0], [0], [1], [0, 0, 1, 1], [], []>} : vector<128x128xbf16>, vector<128x128xbf16>, vector<128x128xf32> -> vector<128x128xf32>
    %97 = arith.extf %76 : vector<128x128xbf16> to vector<128x128xf32>
    %98 = arith.addf %96, %97 : vector<128x128xf32>
    %99 = arith.truncf %98 : vector<128x128xf32> to vector<128x128xbf16>
    %c0_45 = arith.constant 0 : index
    %c0_46 = arith.constant 0 : index
    %100 = vector.load %arg10[%c0_45, %c0_46] : memref<128x128xbf16, #tpu.memory_space<vmem>>, vector<128x128xbf16>
    %cst_47 = arith.constant dense<0.000000e+00> : vector<128x128xf32>
    %101 = tpu.matmul %99, %100, %cst_47 {dimension_numbers = #tpu.dot_dimension_numbers<[1], [0], [0], [1], [0, 0, 1, 1], [], []>} : vector<128x128xbf16>, vector<128x128xbf16>, vector<128x128xf32> -> vector<128x128xf32>
    %102 = arith.truncf %101 : vector<128x128xf32> to vector<128x128xbf16>
    %cst_48 = arith.constant dense<0.000000e+00> : vector<128x128xf32>
    %103 = tpu.matmul %56, %102, %cst_48 {dimension_numbers = #tpu.dot_dimension_numbers<[1], [0], [0], [1], [0, 0, 1, 1], [], []>} : vector<128x128xbf16>, vector<128x128xbf16>, vector<128x128xf32> -> vector<128x128xf32>
    %cst_49 = arith.constant 0.000000e+00 : f32
    %104 = vector.broadcast %cst_49 : f32 to vector<128x128xf32>
    %105 = arith.cmpf ogt, %103, %104 : vector<128x128xf32>
    %cst_50 = arith.constant 2.000000e-01 : f32
    %106 = vector.broadcast %cst_50 : f32 to vector<128x128xf32>
    %107 = arith.mulf %106, %103 : vector<128x128xf32>
    %108 = arith.select %105, %103, %107 : vector<128x128xi1>, vector<128x128xf32>
    %109 = arith.truncf %108 : vector<128x128xf32> to vector<128x128xbf16>
    %cst_51 = arith.constant dense<0.000000e+00> : vector<64x128xf32>
    %110 = tpu.matmul %47, %109, %cst_51 {dimension_numbers = #tpu.dot_dimension_numbers<[1], [0], [0], [1], [0, 0, 1, 1], [], []>} : vector<64x128xbf16>, vector<128x128xbf16>, vector<64x128xf32> -> vector<64x128xf32>
    %111 = arith.extf %30 : vector<64x128xbf16> to vector<64x128xf32>
    %112 = arith.addf %110, %111 : vector<64x128xf32>
    %113 = arith.truncf %112 : vector<64x128xf32> to vector<64x128xbf16>
    %c0_52 = arith.constant 0 : index
    %c0_53 = arith.constant 0 : index
    %114 = vector.load %arg9[%c0_52, %c0_53] : memref<128x128xbf16, #tpu.memory_space<vmem>>, vector<128x128xbf16>
    %cst_54 = arith.constant dense<0.000000e+00> : vector<64x128xf32>
    %115 = tpu.matmul %113, %114, %cst_54 {dimension_numbers = #tpu.dot_dimension_numbers<[1], [0], [0], [1], [0, 0, 1, 1], [], []>} : vector<64x128xbf16>, vector<128x128xbf16>, vector<64x128xf32> -> vector<64x128xf32>
    %116 = vector.broadcast %1 : vector<64x1xf32> to vector<64x128xf32>
    %117 = arith.mulf %115, %116 : vector<64x128xf32>
    %118 = arith.truncf %117 : vector<64x128xf32> to vector<64x128xbf16>
    %cst_55 = arith.constant dense<0.000000e+00> : vector<64x128xf32>
    %119 = tpu.matmul %0, %118, %cst_55 {dimension_numbers = #tpu.dot_dimension_numbers<[1], [0], [0], [1], [0, 0, 1, 1], [], []>} : vector<64x64xbf16>, vector<64x128xbf16>, vector<64x128xf32> -> vector<64x128xf32>
    %120 = vector.broadcast %1 : vector<64x1xf32> to vector<64x128xf32>
    %121 = arith.mulf %119, %120 : vector<64x128xf32>
    %cst_56 = arith.constant 0.000000e+00 : f32
    %122 = vector.broadcast %cst_56 : f32 to vector<64x128xf32>
    %123 = arith.cmpf ogt, %121, %122 : vector<64x128xf32>
    %cst_57 = arith.constant 2.000000e-01 : f32
    %124 = vector.broadcast %cst_57 : f32 to vector<64x128xf32>
    %125 = arith.mulf %124, %121 : vector<64x128xf32>
    %126 = arith.select %123, %121, %125 : vector<64x128xi1>, vector<64x128xf32>
    %127 = arith.truncf %126 : vector<64x128xf32> to vector<64x128xbf16>
    %c0_58 = arith.constant 0 : index
    %c0_59 = arith.constant 0 : index
    %128 = vector.load %arg11[%c0_58, %c0_59] : memref<128x128xbf16, #tpu.memory_space<vmem>>, vector<128x128xbf16>
    %cst_60 = arith.constant dense<0.000000e+00> : vector<64x128xf32>
    %129 = tpu.matmul %127, %128, %cst_60 {dimension_numbers = #tpu.dot_dimension_numbers<[1], [0], [0], [1], [0, 0, 1, 1], [], []>} : vector<64x128xbf16>, vector<128x128xbf16>, vector<64x128xf32> -> vector<64x128xf32>
    %c0_61 = arith.constant 0 : index
    %c0_62 = arith.constant 0 : index
    %130 = vector.load %arg12[%c0_61, %c0_62] : memref<1x128xf32, #tpu.memory_space<vmem>>, vector<1x128xf32>
    %131 = vector.broadcast %130 : vector<1x128xf32> to vector<64x128xf32>
    %132 = arith.addf %129, %131 : vector<64x128xf32>
    %c0_63 = arith.constant 0 : index
    %c0_64 = arith.constant 0 : index
    %133 = vector.load %arg13[%c0_63, %c0_64] : memref<64x128xf32, #tpu.memory_space<vmem>>, vector<64x128xf32>
    tpu.vector_store %arg13[%c0_63, %c0_64], %132 {strides = array<i32>} : memref<64x128xf32, #tpu.memory_space<vmem>>, vector<64x128xf32>,
    return
  }
}

</mosaic_0001>

<bundles_post_ra>
// kernel: my_model_forward.1
= control target key start
LH: loop header
LB: loop body
LE: loop exit
PB: predicated region body
PF: predicated region fallthrough
CT: control target
= control target key end

     0   :  { %vm97_vm0 = vcmask 130048   ;;  %v4276_v1 = vmov 0   ;;  %vm247_vm1 = vcmask 523264   ;;  %s5069_s3 = inlined_call_operand.vmem [shape: bf16[16,128], index: 3, kind: input, shape index: {}]   ;;  %s5070_s2 = inlined_call_operand.vmem [shape: bf16[64,16], index: 2, kind: input, shape index: {}]   ;;  %s5071_s1 = inlined_call_operand.vmem [shape: f32[64,1], index: 1, kind: input, shape index: {}]   ;;  %s5072_s0 = inlined_call_operand.vmem [shape: bf16[64,64], index: 0, kind: input, shape index: {}]   ;;  %s5073_s4 = inlined_call_operand.vmem [shape: bf16[128,128], index: 4, kind: input, shape index: {}]   ;;  %s5074_s7 = inlined_call_operand.vmem [shape: bf16[128,128], index: 7, kind: input, shape index: {}]   ;;  %s5075_s5 = inlined_call_operand.vmem [shape: bf16[128,128], index: 5, kind: input, shape index: {}]   ;;  %s5076_s6 = inlined_call_operand.vmem [shape: bf16[128,128], index: 6, kind: input, shape index: {}]   ;;  %s5077_s8 = inlined_call_operand.vmem [shape: bf16[128,128], index: 8, kind: input, shape index: {}]   ;;  %s5078_s10 = inlined_call_operand.vmem [shape: bf16[128,128], index: 10, kind: input, shape index: {}]   ;;  %s5079_s9 = inlined_call_operand.vmem [shape: bf16[128,128], index: 9, kind: input, shape index: {}]   ;;  %s5080_s11 = inlined_call_operand.vmem [shape: bf16[128,128], index: 11, kind: input, shape index: {}]   ;;  %s5081_s12 = inlined_call_operand.vmem [shape: f32[1,128], index: 12, kind: input, shape index: {}]   ;;  %s5082_s13 = inlined_call_operand.vmem [shape: f32[64,128], index: 13, kind: output, shape index: {}]  }
   0x1   :  { %v4103_v0 = vld [vmem:[%s5069_s3] sm:$0xff]   ;;  %4101 = vset.pattern.permute.xlu0 %v4276_v1  ;;  %4102 = vset.pattern.permute.xlu1 %v4276_v1  ;;  %v4105_v3 = vld [vmem:[%s5070_s2 + $0x8] sm:$0xff]   ;;  %v4106_v4 = vld [vmem:[%s5070_s2 + $0x10] sm:$0xff]  }
   0x2   :  { %v4104_v2 = vld [vmem:[%s5070_s2] sm:$0xff]   ;;  %3570 = vmatprep.subr.bf16.mxu1 %v4103_v0  ;;  %v55_v6 = vld [vmem:[%s5071_s1 + $0x10] sm:$0xff]  ;;  %v54_v7 = vld [vmem:[%s5071_s1 + $0x8] sm:$0xff] }
   0x3   :  { %3571 = vmatpush3.bf16.msra.mxu1 %v4103_v0  ;;  %3572 = vmatprep.mubr.msk.bf16.mxu1 %vm97_vm0, %v4104_v2  ;;  %v53_v5 = vld [vmem:[%s5071_s1] sm:$0xff]  ;;  %v56_v8 = vld [vmem:[%s5071_s1 + $0x18] sm:$0xff]  ;;  %v58_v11 = vld [vmem:[%s5071_s1 + $0x28] sm:$0xff] }
   0x4   :  { %177 = vperm.xlu0 %4101, %v53_v5   ;;  %187 = vperm.xlu1 %4102, %v55_v6   ;;  %v4107_v9 = vld [vmem:[%s5070_s2 + $0x18] sm:$0xff]   ;;  %v57_v10 = vld [vmem:[%s5071_s1 + $0x20] sm:$0xff]  ;;  %v59_v12 = vld [vmem:[%s5071_s1 + $0x30] sm:$0xff] }
   0x5   :  { %v60_v13 = vld [vmem:[%s5071_s1 + $0x38] sm:$0xff]  ;;  %v4393_v14 = vld [vmem:[%s5072_s0] sm:$0xff]   ;;  %v4113_v16 = vld [vmem:[%s5073_s4 + $0x8] sm:$0xff]  }
   0x6   :  { %3573 = vmatmul.mubr.msk.bf16.vlgmr.msra.gmra.mrb[0].mxu1 %vm97_vm0, %v4105_v3  ;;  %v4112_v15 = vld [vmem:[%s5073_s4] sm:$0xff]   ;;  %v4114_v17 = vld [vmem:[%s5073_s4 + $0x10] sm:$0xff]   ;;  %v4115_v18 = vld [vmem:[%s5073_s4 + $0x18] sm:$0xff]  }
   0x7   :  { %3576 = vmatprep.mubr.msk.bf16.mxu1 %vm97_vm0, %v4106_v4  ;;  %3596 = vmatprep.subr.bf16.mxu0 %v4112_v15  ;;  %v4116_v19 = vld [vmem:[%s5073_s4 + $0x20] sm:$0xff]   ;;  %v4439_v48 = vld [vmem:[%s5072_s0 + $0x8] sm:$0xff]   ;;  %v4444_v49 = vld [vmem:[%s5072_s0 + $0x10] sm:$0xff]  }
   0x8   :  { %182 = vperm.xlu0 %4101, %v54_v7   ;;  %192 = vperm.xlu1 %4102, %v56_v8   ;;  %v4453_v50 = vld [vmem:[%s5072_s0 + $0x18] sm:$0xff]   ;;  %v4117_v51 = vld [vmem:[%s5073_s4 + $0x28] sm:$0xff]   ;;  %v4118_v52 = vld [vmem:[%s5073_s4 + $0x30] sm:$0xff]  }
   0x9   :  { %3597 = vmatpush3.bf16.msra.mxu0 %v4112_v15  ;;  %v4119_v53 = vld [vmem:[%s5073_s4 + $0x38] sm:$0xff]  }
   0xa   :  { %3598 = vmatprep.subr.bf16.mxu0 %v4113_v16 }
   0xc   :  { %197 = vperm.xlu0 %4101, %v57_v10   ;;  %202 = vperm.xlu1 %4102, %v58_v11  }
   0xd   :  { %3599 = vmatpush3.bf16.msra.mxu0 %v4113_v16 }
   0xe   :  { %3577 = vmatmul.mubr.msk.bf16.gmra.mrb[4].mxu1 %vm97_vm0, %v4107_v9  ;;  %3600 = vmatprep.subr.bf16.mxu0 %v4114_v17 }
   0xf   :  { %3588 = vmatprep.mubr.msk.bf16.mxu1 %vm247_vm1, %v4393_v14 }
  0x10   :  { %207 = vperm.xlu0 %4101, %v59_v12   ;;  %212 = vperm.xlu1 %4102, %v60_v13  }
  0x11   :  { %3601 = vmatpush3.bf16.msra.mxu0 %v4114_v17 }
  0x12   :  { %3602 = vmatprep.subr.bf16.mxu0 %v4115_v18 }
  0x15   :  { %3603 = vmatpush3.bf16.msra.mxu0 %v4115_v18 }
  0x16   :  { %3604 = vmatprep.subr.bf16.mxu0 %v4116_v19 }
  0x19   :  { %3605 = vmatpush3.bf16.msra.mxu0 %v4116_v19 }
  0x1a   :  { %3606 = vmatprep.subr.bf16.mxu0 %v4117_v51 }
  0x1d   :  { %3607 = vmatpush3.bf16.msra.mxu0 %v4117_v51 }
  0x1e   :  { %3608 = vmatprep.subr.bf16.mxu0 %v4118_v52 }
  0x21   :  { %3609 = vmatpush3.bf16.msra.mxu0 %v4118_v52 }
  0x22   :  { %3610 = vmatprep.subr.bf16.mxu0 %v4119_v53 }
  0x25   :  { %3611 = vmatpush3.bf16.msra.mxu0 %v4119_v53 }
  0x83   :  { %v4412_v20 = vpop.permute.xlu0 %177  ;;  %v4414_v21 = vpop.permute.xlu1 %187 }
  0x87   :  { %v4416_v22 = vpop.permute.xlu0 %182  ;;  %v4418_v23 = vpop.permute.xlu1 %192 }
  0x8b   :  { %v4420_v27 = vpop.permute.xlu0 %197  ;;  %v4424_v31 = vpop.permute.xlu1 %202 }
  0x8c   :  { %5085 = vst [vmem:[#allocation2_spill] sm:$0xff] %v4424_v31 }
  0x8f   :  { %v4428_v37 = vpop.permute.xlu0 %207  ;;  %v4430_v39 = vpop.permute.xlu1 %212 }
  0xd9   :  { %v3574_v24 = vpop.f32.mrb[0].mxu1 }
  0xda   :  { %v144_v25 = vpop.f32.mrb[1].mxu1  ;;  %v217_v28 = vmul.f32 %v3574_v24, %v4414_v21 }
  0xdb   :  { %v3575_v26 = vpop.f32.mrb[2].mxu1  ;;  %v215_v32 = vmul.f32 %v4412_v20, %v144_v25 }
  0xdc   :  { %v218_v29 = vmul.f32 %v3575_v26, %v4418_v23  ;;  %v147_v30 = vpop.f32.mrb[3].mxu1 }
  0xdd   :  { %v216_v33 = vmul.f32 %v4416_v22, %v147_v30 }
  0xde   :  { %v224_v34 = vpack.c.bf16 %v218_v29, %v217_v28 }
  0xdf   :  { %v223_v35 = vpack.c.bf16 %v216_v33, %v215_v32 }
  0xe1   :  { %v3578_v36 = vpop.f32.mrb[4].mxu1  ;;  %3580 = vmatprep.subr.bf16.mxu1 %v223_v35 }
  0xe2   :  { %v160_v38 = vpop.f32.mrb[5].mxu1  ;;  %3581 = vmatpush3.bf16.msra.mxu1 %v223_v35  ;;  %v221_v41 = vmul.f32 %v3578_v36, %v4428_v37 }
  0xe3   :  { %v3579_v40 = vpop.f32.mrb[6].mxu1  ;;  %3582 = vmatprep.subr.bf16.mxu1 %v224_v34  ;;  %v219_v44 = vmul.f32 %v4420_v27, %v160_v38 }
  0xe4   :  { %v222_v42 = vmul.f32 %v3579_v40, %v4430_v39  ;;  %v163_v43 = vpop.f32.mrb[7].mxu1 }
  0xe5   :  { %v220_v45 = vmul.f32 %v4424_v31, %v163_v43 }
  0xe6   :  { %v226_v46 = vpack.c.bf16 %v222_v42, %v221_v41  ;;  %3583 = vmatpush3.bf16.msra.mxu1 %v224_v34 }
  0xe7   :  { %v225_v47 = vpack.c.bf16 %v220_v45, %v219_v44 }
  0xe9   :  { %3584 = vmatprep.subr.bf16.mxu1 %v225_v47 }
  0xea   :  { %3585 = vmatpush3.bf16.msra.mxu1 %v225_v47 }
  0xeb   :  { %3586 = vmatprep.subr.bf16.mxu1 %v226_v46 }
  0xee   :  { %3587 = vmatpush3.bf16.msra.mxu1 %v226_v46 }
  0xf1   :  { %3589 = vmatmul.mubr.msk.bf16.vlgmr.msra.gmra.mrb[8].mxu1 %vm247_vm1, %v4439_v48 }
  0xf2   :  { %3592 = vmatprep.mubr.msk.bf16.mxu1 %vm247_vm1, %v4444_v49 }
  0xf9   :  { %3593 = vmatmul.mubr.msk.bf16.gmra.mrb[12].mxu1 %vm247_vm1, %v4453_v50 }
  0xfa   :  { %3628 = vmatprep.mubr.msk.bf16.mxu1 %vm247_vm1, %v4393_v14 }
 0x1c4   :  { %v3590_v54 = vpop.f32.mrb[8].mxu1 }
 0x1c5   :  { %v327_v55 = vmul.f32 %v3590_v54, %v4414_v21  ;;  %v294_v56 = vpop.f32.mrb[9].mxu1 }
 0x1c6   :  { %v325_v57 = vmul.f32 %v294_v56, %v4412_v20  ;;  %v3591_v58 = vpop.f32.mrb[10].mxu1 }
 0x1c7   :  { %v343_v59 = vmul.f32 0.2, %v327_v55  ;;  %v328_v60 = vmul.f32 %v3591_v58, %v4418_v23  ;;  %v297_v61 = vpop.f32.mrb[11].mxu1  ;;  %vm335_vm2 = vcmp.gt.f32.partialorder %v327_v55, 0.0  ;;  %v4120_v58 = vld [vmem:[%s5074_s7] sm:$0xff]  }
 0x1c8   :  { %v341_v62 = vmul.f32 0.2, %v325_v57  ;;  %v326_v63 = vmul.f32 %v297_v61, %v4416_v22  ;;  %vm333_vm4 = vcmp.gt.f32.partialorder %v325_v57, 0.0  ;;  %v4123_v61 = vld [vmem:[%s5074_s7 + $0x18] sm:$0xff]  }
 0x1c9   :  { %vm336_vm3 = vcmp.gt.f32.partialorder %v328_v60, 0.0  ;;  %v344_v0 = vmul.f32 0.2, %v328_v60  ;;  %v351_v2 = vsel %vm335_vm2, %v327_v55, %v343_v59  ;;  %v4121_v59 = vld [vmem:[%s5074_s7 + $0x8] sm:$0xff]  }
 0x1ca   :  { %v342_v1 = vmul.f32 0.2, %v326_v63  ;;  %vm334_vm5 = vcmp.gt.f32.partialorder %v326_v63, 0.0  ;;  %v349_v5 = vsel %vm333_vm4, %v325_v57, %v341_v62  ;;  %v4124_v62 = vld [vmem:[%s5074_s7 + $0x20] sm:$0xff]  }
 0x1cb   :  { %v352_v3 = vsel %vm336_vm3, %v328_v60, %v344_v0  ;;  %v4122_v60 = vld [vmem:[%s5074_s7 + $0x10] sm:$0xff]  }
 0x1cc   :  { %v3594_v4 = vpop.f32.mrb[12].mxu1  ;;  %v350_v6 = vsel %vm334_vm5, %v326_v63, %v342_v1  ;;  %v358_v7 = vpack.c.bf16 %v352_v3, %v351_v2  ;;  %v4125_v63 = vld [vmem:[%s5074_s7 + $0x28] sm:$0xff]   ;;  %v4126_v0 = vld [vmem:[%s5074_s7 + $0x30] sm:$0xff]   ;;  %v4127_v1 = vld [vmem:[%s5074_s7 + $0x38] sm:$0xff]  }
 0x1cd   :  { %v331_v8 = vmul.f32 %v3594_v4, %v4428_v37  ;;  %v310_v9 = vpop.f32.mrb[13].mxu1  ;;  %v357_v10 = vpack.c.bf16 %v350_v6, %v349_v5 }
 0x1ce   :  { %v329_v11 = vmul.f32 %v310_v9, %v4420_v27  ;;  %v3595_v12 = vpop.f32.mrb[14].mxu1 }
 0x1cf   :  { %v347_v13 = vmul.f32 0.2, %v331_v8  ;;  %v332_v15 = vmul.f32 %v3595_v12, %v4430_v39  ;;  %v313_v16 = vpop.f32.mrb[15].mxu1  ;;  %3612 = vmatprep.mubr.bf16.mxu0 %v357_v10  ;;  %vm339_vm6 = vcmp.gt.f32.partialorder %v331_v8, 0.0 }
 0x1d0   :  { %v345_v17 = vmul.f32 0.2, %v329_v11  ;;  %v330_v18 = vmul.f32 %v313_v16, %v4424_v31  ;;  %3613 = vmatmul.mubr.bf16.vlgmr.msra.gmra.mrb[0].mxu0 %v358_v7  ;;  %vm337_vm7 = vcmp.gt.f32.partialorder %v329_v11, 0.0 }
 0x1d1   :  { %vm340_vm8 = vcmp.gt.f32.partialorder %v332_v15, 0.0  ;;  %v348_v19 = vmul.f32 0.2, %v332_v15  ;;  %v355_v25 = vsel %vm339_vm6, %v331_v8, %v347_v13 }
 0x1d2   :  { %vm338_vm9 = vcmp.gt.f32.partialorder %v330_v18, 0.0  ;;  %v346_v24 = vmul.f32 0.2, %v330_v18  ;;  %v353_v28 = vsel %vm337_vm7, %v329_v11, %v345_v17 }
 0x1d3   :  { %v356_v26 = vsel %vm340_vm8, %v332_v15, %v348_v19 }
 0x1d4   :  { %v354_v29 = vsel %vm338_vm9, %v330_v18, %v346_v24  ;;  %v360_v30 = vpack.c.bf16 %v356_v26, %v355_v25 }
 0x1d5   :  { %v359_v32 = vpack.c.bf16 %v354_v29, %v353_v28 }
 0x1d7   :  { %3616 = vmatprep.mubr.bf16.mxu0 %v359_v32 }
 0x1d8   :  { %3617 = vmatmul.mubr.bf16.gmra.mrb[4].mxu0 %v360_v30 }
 0x2a3   :  { %v3614_v33 = vpop.f32.mrb[0].mxu0 }
 0x2a4   :  { %v459_v34 = vpop.f32.mrb[1].mxu0  ;;  %v492_v36 = vmul.f32 %v3614_v33, %v4414_v21 }
 0x2a5   :  { %v3615_v35 = vpop.f32.mrb[2].mxu0  ;;  %v490_v41 = vmul.f32 %v459_v34, %v4412_v20 }
 0x2a6   :  { %v493_v38 = vmul.f32 %v3615_v35, %v4418_v23  ;;  %v462_v40 = vpop.f32.mrb[3].mxu0 }
 0x2a7   :  { %v491_v42 = vmul.f32 %v462_v40, %v4416_v22 }
 0x2a8   :  { %v499_v43 = vpack.c.bf16 %v493_v38, %v492_v36 }
 0x2a9   :  { %v498_v44 = vpack.c.bf16 %v491_v42, %v490_v41 }
 0x2ab   :  { %v3618_v45 = vpop.f32.mrb[4].mxu0  ;;  %3620 = vmatprep.subr.bf16.mxu1 %v498_v44 }
 0x2ac   :  { %v475_v46 = vpop.f32.mrb[5].mxu0  ;;  %3621 = vmatpush3.bf16.msra.mxu1 %v498_v44  ;;  %v496_v51 = vmul.f32 %v3618_v45, %v4428_v37 }
 0x2ad   :  { %v3619_v47 = vpop.f32.mrb[6].mxu0  ;;  %3622 = vmatprep.subr.bf16.mxu1 %v499_v43  ;;  %v494_v54 = vmul.f32 %v475_v46, %v4420_v27 }
 0x2ae   :  { %v497_v52 = vmul.f32 %v3619_v47, %v4430_v39  ;;  %v478_v53 = vpop.f32.mrb[7].mxu0  ;;  %v732_v47 = vlaneseq }
 0x2af   :  { %v495_v55 = vmul.f32 %v478_v53, %v4424_v31 }
 0x2b0   :  { %v501_v56 = vpack.c.bf16 %v497_v52, %v496_v51  ;;  %3623 = vmatpush3.bf16.msra.mxu1 %v499_v43  ;;  %v4544_v51 = vand.u32 127, %v732_v47 }
 0x2b1   :  { %v500_v57 = vpack.c.bf16 %v495_v55, %v494_v54 }
 0x2b2   :  { %vm734_vm3 = vcmp.lt.s32.totalorder %v4544_v51, 32 }
 0x2b3   :  { %3624 = vmatprep.subr.bf16.mxu1 %v500_v57 }
 0x2b4   :  { %3625 = vmatpush3.bf16.msra.mxu1 %v500_v57 }
 0x2b5   :  { %3626 = vmatprep.subr.bf16.mxu1 %v501_v56 }
 0x2b8   :  { %3627 = vmatpush3.bf16.msra.mxu1 %v501_v56 }
 0x2b9   :  { %3636 = vmatprep.subr.bf16.mxu1 %v4120_v58 }
 0x2bb   :  { %3629 = vmatmul.mubr.msk.bf16.vlgmr.msra.gmra.mrb[16].mxu1 %vm247_vm1, %v4439_v48 }
 0x2bc   :  { %3632 = vmatprep.mubr.msk.bf16.mxu1 %vm247_vm1, %v4444_v49  ;;  %3637 = vmatpush3.bf16.msra.mxu1 %v4120_v58 }
 0x2bd   :  { %3638 = vmatprep.subr.bf16.mxu1 %v4121_v59 }
 0x2c0   :  { %3639 = vmatpush3.bf16.msra.mxu1 %v4121_v59 }
 0x2c1   :  { %3640 = vmatprep.subr.bf16.mxu1 %v4122_v60 }
 0x2c3   :  { %3633 = vmatmul.mubr.msk.bf16.gmra.mrb[20].mxu1 %vm247_vm1, %v4453_v50 }
 0x2c4   :  { %3641 = vmatpush3.bf16.msra.mxu1 %v4122_v60 }
 0x2c5   :  { %3642 = vmatprep.subr.bf16.mxu1 %v4123_v61 }
 0x2c8   :  { %3643 = vmatpush3.bf16.msra.mxu1 %v4123_v61 }
 0x2c9   :  { %3644 = vmatprep.subr.bf16.mxu1 %v4124_v62 }
 0x2cc   :  { %3645 = vmatpush3.bf16.msra.mxu1 %v4124_v62 }
 0x2cd   :  { %3646 = vmatprep.subr.bf16.mxu1 %v4125_v63 }
 0x2d0   :  { %3647 = vmatpush3.bf16.msra.mxu1 %v4125_v63 }
 0x2d1   :  { %3648 = vmatprep.subr.bf16.mxu1 %v4126_v0 }
 0x2d4   :  { %3649 = vmatpush3.bf16.msra.mxu1 %v4126_v0 }
 0x2d5   :  { %3650 = vmatprep.subr.bf16.mxu1 %v4127_v1 }
 0x2d8   :  { %3651 = vmatpush3.bf16.msra.mxu1 %v4127_v1 }
 0x38e   :  { %v3630_v2 = vpop.f32.mrb[16].mxu1 }
 0x38f   :  { %v569_v3 = vmul.f32 %v3630_v2, %v4414_v21  ;;  %v536_v4 = vpop.f32.mrb[17].mxu1 }
 0x390   :  { %v567_v5 = vmul.f32 %v536_v4, %v4412_v20  ;;  %v3631_v6 = vpop.f32.mrb[18].mxu1 }
 0x391   :  { %v585_v7 = vmul.f32 0.2, %v569_v3  ;;  %v570_v8 = vmul.f32 %v3631_v6, %v4418_v23  ;;  %v539_v9 = vpop.f32.mrb[19].mxu1  ;;  %vm577_vm10 = vcmp.gt.f32.partialorder %v569_v3, 0.0 }
 0x392   :  { %v583_v10 = vmul.f32 0.2, %v567_v5  ;;  %v568_v11 = vmul.f32 %v539_v9, %v4416_v22  ;;  %vm575_vm11 = vcmp.gt.f32.partialorder %v567_v5, 0.0 }
 0x393   :  { %vm578_vm12 = vcmp.gt.f32.partialorder %v570_v8, 0.0  ;;  %v586_v12 = vmul.f32 0.2, %v570_v8  ;;  %v593_v15 = vsel %vm577_vm10, %v569_v3, %v585_v7 }
 0x394   :  { %vm576_vm13 = vcmp.gt.f32.partialorder %v568_v11, 0.0  ;;  %v584_v13 = vmul.f32 0.2, %v568_v11  ;;  %v591_v17 = vsel %vm575_vm11, %v567_v5, %v583_v10 }
 0x395   :  { %v594_v16 = vsel %vm578_vm12, %v570_v8, %v586_v12 }
 0x396   :  { %v4518_v18 = vpack.c.bf16 %v594_v16, %v593_v15  ;;  %v592_v19 = vsel %vm576_vm13, %v568_v11, %v584_v13  ;;  %v3634_v24 = vpop.f32.mrb[20].mxu1 }
 0x397   :  { %v4520_v25 = vpack.c.bf16 %v592_v19, %v591_v17  ;;  %v573_v26 = vmul.f32 %v3634_v24, %v4428_v37  ;;  %v552_v28 = vpop.f32.mrb[21].mxu1 }
 0x398   :  { %v571_v29 = vmul.f32 %v552_v28, %v4420_v27  ;;  %v3635_v30 = vpop.f32.mrb[22].mxu1 }
 0x399   :  { %v589_v32 = vmul.f32 0.2, %v573_v26  ;;  %v574_v33 = vmul.f32 %v3635_v30, %v4430_v39  ;;  %v555_v34 = vpop.f32.mrb[23].mxu1  ;;  %3652 = vmatprep.mubr.bf16.mxu1 %v4520_v25  ;;  %3660 = vmatprep.subr.bf16.mxu0 %v4520_v25  ;;  %vm581_vm14 = vcmp.gt.f32.partialorder %v573_v26, 0.0 }
 0x39a   :  { %v587_v35 = vmul.f32 0.2, %v571_v29  ;;  %v572_v36 = vmul.f32 %v555_v34, %v4424_v31  ;;  %3653 = vmatmul.mubr.bf16.vlgmr.msra.gmra.mrb[24].mxu1 %v4518_v18  ;;  %3661 = vmatpush3.bf16.msra.mxu0 %v4520_v25  ;;  %vm579_vm15 = vcmp.gt.f32.partialorder %v571_v29, 0.0 }
 0x39b   :  { %vm582_vm0 = vcmp.gt.f32.partialorder %v574_v33, 0.0  ;;  %v590_v38 = vmul.f32 0.2, %v574_v33  ;;  %3662 = vmatprep.subr.bf16.mxu0 %v4518_v18  ;;  %v597_v41 = vsel %vm581_vm14, %v573_v26, %v589_v32 }
 0x39c   :  { %vm580_vm2 = vcmp.gt.f32.partialorder %v572_v36, 0.0  ;;  %v588_v40 = vmul.f32 0.2, %v572_v36  ;;  %v595_v43 = vsel %vm579_vm15, %v571_v29, %v587_v35 }
 0x39d   :  { %v598_v42 = vsel %vm582_vm0, %v574_v33, %v590_v38 }
 0x39e   :  { %v4531_v44 = vpack.c.bf16 %v598_v42, %v597_v41  ;;  %v596_v45 = vsel %vm580_vm2, %v572_v36, %v588_v40  ;;  %3663 = vmatpush3.bf16.msra.mxu0 %v4518_v18 }
 0x39f   :  { %v4534_v46 = vpack.c.bf16 %v596_v45, %v595_v43 }
 0x3a1   :  { %3656 = vmatprep.mubr.bf16.mxu1 %v4534_v46  ;;  %3664 = vmatprep.subr.bf16.mxu0 %v4534_v46 }
 0x3a2   :  { %3657 = vmatmul.mubr.bf16.gmra.mrb[28].mxu1 %v4531_v44  ;;  %3665 = vmatpush3.bf16.msra.mxu0 %v4534_v46 }
 0x3a3   :  { %3666 = vmatprep.subr.bf16.mxu0 %v4531_v44  ;;  %3692 = vmatprep.mubr.msk.bf16.mxu1 %vm247_vm1, %v4393_v14 }
 0x3a6   :  { %3667 = vmatpush3.bf16.msra.mxu0 %v4531_v44 }
 0x46d   :  { %v3654_v52 = vpop.f32.mrb[24].mxu1 }
 0x46e   :  { %v701_v53 = vpop.f32.mrb[25].mxu1  ;;  %v737_v54 = vsel %vm734_vm3, %v3654_v52, -1e+30 }
 0x46f   :  { %747 = vmax.xlane.f32.xlu0 %v737_v54  ;;  %v3655_v55 = vpop.f32.mrb[26].mxu1  ;;  %v735_v14 = vsel %vm734_vm3, %v701_v53, -1e+30 }
 0x470   :  { %v704_v56 = vpop.f32.mrb[27].mxu1  ;;  %v738_v60 = vsel %vm734_vm3, %v3655_v55, -1e+30 }
 0x471   :  { %v736_v57 = vsel %vm734_vm3, %v704_v56, -1e+30 }
 0x472   :  { %745 = vmax.xlane.f32.xlu1 %v736_v57 }
 0x473   :  { %743 = vmax.xlane.f32.xlu0 %v735_v14 }
 0x475   :  { %v3658_v58 = vpop.f32.mrb[28].mxu1 }
 0x476   :  { %v717_v59 = vpop.f32.mrb[29].mxu1  ;;  %v741_v1 = vsel %vm734_vm3, %v3658_v58, -1e+30 }
 0x477   :  { %749 = vmax.xlane.f32.xlu0 %v738_v60  ;;  %v3659_v61 = vpop.f32.mrb[30].mxu1  ;;  %v739_v62 = vsel %vm734_vm3, %v717_v59, -1e+30 }
 0x478   :  { %751 = vmax.xlane.f32.xlu1 %v739_v62  ;;  %v720_v63 = vpop.f32.mrb[31].mxu1  ;;  %v742_v2 = vsel %vm734_vm3, %v3659_v61, -1e+30 }
 0x479   :  { %v740_v0 = vsel %vm734_vm3, %v720_v63, -1e+30 }
 0x47b   :  { %753 = vmax.xlane.f32.xlu0 %v740_v0 }
 0x47c   :  { %755 = vmax.xlane.f32.xlu1 %v741_v1 }
 0x47f   :  { %757 = vmax.xlane.f32.xlu0 %v742_v2 }
 0x4fc   :  { %v748_v3 = vpop.xlane.xlu0 %747 }
 0x4fd   :  { %v761_v4 = vsub.f32 %v737_v54, %v748_v3 }
 0x4ff   :  { %v771_v5 = vmul.f32 1.442695, %v761_v4  ;;  %v746_v7 = vpop.xlane.xlu1 %745 }
 0x500   :  { %v744_v6 = vpop.xlane.xlu0 %743  ;;  %v760_v11 = vsub.f32 %v736_v57, %v746_v7 }
 0x501   :  { %4176 = vpow2.f32 %v771_v5  ;;  %v759_v8 = vsub.f32 %v735_v14, %v744_v6 }
 0x502   :  { %v769_v24 = vmul.f32 1.442695, %v760_v11 }
 0x503   :  { %v767_v9 = vmul.f32 1.442695, %v759_v8 }
 0x504   :  { %v750_v10 = vpop.xlane.xlu0 %749 }
 0x505   :  { %4178 = vpow2.f32 %v767_v9  ;;  %v762_v12 = vsub.f32 %v738_v60, %v750_v10  ;;  %v752_v13 = vpop.xlane.xlu1 %751 }
 0x506   :  { %v763_v15 = vsub.f32 %v739_v62, %v752_v13 }
 0x507   :  { %v773_v16 = vmul.f32 1.442695, %v762_v12 }
 0x508   :  { %v775_v17 = vmul.f32 1.442695, %v763_v15  ;;  %v754_v19 = vpop.xlane.xlu0 %753 }
 0x509   :  { %4180 = vpow2.f32 %v773_v16  ;;  %v764_v26 = vsub.f32 %v740_v0, %v754_v19  ;;  %v756_v28 = vpop.xlane.xlu1 %755 }
 0x50a   :  { %4182 = vpow2.f32 %v775_v17  ;;  %v765_v29 = vsub.f32 %v741_v1, %v756_v28 }
 0x50b   :  { %v4177_v30 = vpop.eup %4176  ;;  %4184 = vpow2.f32 %v769_v24  ;;  %v777_v34 = vmul.f32 1.442695, %v764_v26 }
 0x50c   :  { %v779_v32 = vmul.f32 1.442695, %v765_v29  ;;  %787 = vadd.xlane.f32.xlu1 %v4177_v30  ;;  %v758_v33 = vpop.xlane.xlu0 %757 }
 0x50d   :  { %v766_v35 = vsub.f32 %v742_v2, %v758_v33 }
 0x50e   :  { %4186 = vpow2.f32 %v779_v32 }
 0x50f   :  { %v4179_v36 = vpop.eup %4178  ;;  %4188 = vpow2.f32 %v777_v34  ;;  %v781_v38 = vmul.f32 1.442695, %v766_v35 }
 0x510   :  { %783 = vadd.xlane.f32.xlu1 %v4179_v36 }
 0x511   :  { %4190 = vpow2.f32 %v781_v38  ;;  %v4129_v38 = vld [vmem:[%s5075_s5 + $0x8] sm:$0xff]  }
 0x513   :  { %v4181_v40 = vpop.eup %4180 }
 0x514   :  { %v4183_v41 = vpop.eup %4182  ;;  %789 = vadd.xlane.f32.xlu0 %v4181_v40 }
 0x515   :  { %791 = vadd.xlane.f32.xlu1 %v4183_v41  ;;  %v4185_v42 = vpop.eup %4184 }
 0x518   :  { %v4187_v43 = vpop.eup %4186  ;;  %785 = vadd.xlane.f32.xlu0 %v4185_v42 }
 0x519   :  { %795 = vadd.xlane.f32.xlu1 %v4187_v43  ;;  %v4189_v45 = vpop.eup %4188 }
 0x51b   :  { %v4191_v47 = vpop.eup %4190 }
 0x51c   :  { %793 = vadd.xlane.f32.xlu0 %v4189_v45 }
 0x520   :  { %797 = vadd.xlane.f32.xlu0 %v4191_v47 }
 0x599   :  { %v788_v52 = vpop.xlane.xlu1 %787 }
 0x59d   :  { %v784_v53 = vpop.xlane.xlu1 %783 }
 0x59e   :  { %4192 = vrcp.f32 %v784_v53 }
 0x5a1   :  { %v790_v54 = vpop.xlane.xlu0 %789 }
 0x5a2   :  { %4194 = vrcp.f32 %v790_v54  ;;  %v792_v55 = vpop.xlane.xlu1 %791 }
 0x5a3   :  { %4196 = vrcp.f32 %v788_v52 }
 0x5a5   :  { %v786_v56 = vpop.xlane.xlu0 %785 }
 0x5a6   :  { %4198 = vrcp.f32 %v786_v56  ;;  %v796_v57 = vpop.xlane.xlu1 %795  ;;  %v4135_v56 = vld [vmem:[%s5075_s5 + $0x38] sm:$0xff]  }
 0x5a7   :  { %4200 = vrcp.f32 %v792_v55 }
 0x5a8   :  { %v4193_v58 = vpop.eup %4192 }
 0x5a9   :  { %v794_v14 = vpop.xlane.xlu0 %793  ;;  %v800_v62 = vmul.f32 %v4193_v58, %v4179_v36  ;;  %v4128_v36 = vld [vmem:[%s5075_s5] sm:$0xff]  }
 0x5aa   :  { %4202 = vrcp.f32 %v794_v14 }
 0x5ab   :  { %4204 = vrcp.f32 %v796_v57  ;;  %v964_v5 = vmul.f32 %v800_v62, %v4412_v20 }
 0x5ac   :  { %v4195_v59 = vpop.eup %4194 }
 0x5ad   :  { %v798_v60 = vpop.xlane.xlu0 %797  ;;  %v4197_v61 = vpop.eup %4196  ;;  %v806_v63 = vmul.f32 %v4195_v59, %v4181_v40  ;;  %v4130_v40 = vld [vmem:[%s5075_s5 + $0x10] sm:$0xff]  }
 0x5ae   :  { %4206 = vrcp.f32 %v798_v60  ;;  %v804_v2 = vmul.f32 %v4197_v61, %v4177_v30 }
 0x5af   :  { %v967_v7 = vmul.f32 %v806_v63, %v4418_v23 }
 0x5b0   :  { %v4199_v0 = vpop.eup %4198  ;;  %v966_v10 = vmul.f32 %v804_v2, %v4414_v21  ;;  %v4570_v16 = vpack.c.bf16 %v806_v63, %v804_v2 }
 0x5b1   :  { %v802_v1 = vmul.f32 %v4199_v0, %v4185_v42  ;;  %v4201_v3 = vpop.eup %4200  ;;  %v4133_v42 = vld [vmem:[%s5075_s5 + $0x28] sm:$0xff]  }
 0x5b2   :  { %v808_v11 = vmul.f32 %v4201_v3, %v4183_v41  ;;  %v973_v15 = vpack.c.bf16 %v967_v7, %v966_v10  ;;  %v4131_v41 = vld [vmem:[%s5075_s5 + $0x18] sm:$0xff]  }
 0x5b3   :  { %v4563_v4 = vpack.c.bf16 %v802_v1, %v800_v62  ;;  %v965_v6 = vmul.f32 %v802_v1, %v4416_v22 }
 0x5b4   :  { %v4203_v8 = vpop.eup %4202  ;;  %v968_v24 = vmul.f32 %v808_v11, %v4420_v27 }
 0x5b5   :  { %819 = vxpose.xlu1.c.b16.start [1/4] (short) %v4563_v4, 128  ;;  %v972_v9 = vpack.c.bf16 %v965_v6, %v964_v5  ;;  %v810_v12 = vmul.f32 %v4203_v8, %v4189_v45  ;;  %v4205_v13 = vpop.eup %4204 }
 0x5b6   :  { %v812_v26 = vmul.f32 %v4205_v13, %v4187_v43 }
 0x5b7   :  { %1045 = vxpose.xlu0.c.b16.start [1/4] (short) %v972_v9, 128  ;;  %3684 = vmatprep.subr.bf16.mxu1 %v972_v9  ;;  %v969_v17 = vmul.f32 %v810_v12, %v4424_v31  ;;  %v4575_v30 = vpack.c.bf16 %v810_v12, %v808_v11 }
 0x5b8   :  { %v4207_v19 = vpop.eup %4206  ;;  %3685 = vmatpush3.bf16.msra.mxu1 %v972_v9  ;;  %v970_v33 = vmul.f32 %v812_v26, %v4428_v37 }
 0x5b9   :  { %3686 = vmatprep.subr.bf16.mxu1 %v973_v15  ;;  %820 = vxpose.xlu1.c.b16.cont [2/4] (short) %v4570_v16, 128  ;;  %v814_v28 = vmul.f32 %v4207_v19, %v4191_v47  ;;  %v974_v29 = vpack.c.bf16 %v969_v17, %v968_v24 }
 0x5bb   :  { %1046 = vxpose.xlu0.c.b16.cont [2/4] (short) %v973_v15, 128  ;;  %v971_v32 = vmul.f32 %v814_v28, %v4430_v39  ;;  %v4580_v35 = vpack.c.bf16 %v814_v28, %v812_v26 }
 0x5bc   :  { %3687 = vmatpush3.bf16.msra.mxu1 %v973_v15 }
 0x5bd   :  { %3688 = vmatprep.subr.bf16.mxu1 %v974_v29  ;;  %821 = vxpose.xlu1.c.b16.cont [3/4] (short) %v4575_v30, 128  ;;  %v975_v34 = vpack.c.bf16 %v971_v32, %v970_v33 }
 0x5bf   :  { %1047 = vxpose.xlu0.c.b16.cont [3/4] (short) %v974_v29, 128 }
 0x5c0   :  { %3689 = vmatpush3.bf16.msra.mxu1 %v974_v29 }
 0x5c1   :  { %3690 = vmatprep.subr.bf16.mxu1 %v975_v34  ;;  %822 = vxpose.xlu1.c.b16.end [4/4] (short) %v4580_v35, 128 }
 0x5c3   :  { %1048 = vxpose.xlu0.c.b16.end [4/4] (short) %v975_v34, 128 }
 0x5c4   :  { %3691 = vmatpush3.bf16.msra.mxu1 %v975_v34 }
 0x5c5   :  { %3724 = vmatprep.subr.bf16.mxu1 %v4128_v36 }
 0x5c7   :  { %3693 = vmatmul.mubr.msk.bf16.vlgmr.msra.gmra.mrb[32].mxu1 %vm247_vm1, %v4439_v48  ;;  %v4132_v48 = vld [vmem:[%s5075_s5 + $0x20] sm:$0xff]  }
 0x5c8   :  { %3696 = vmatprep.mubr.msk.bf16.mxu1 %vm247_vm1, %v4444_v49  ;;  %3725 = vmatpush3.bf16.msra.mxu1 %v4128_v36 }
 0x5c9   :  { %3726 = vmatprep.subr.bf16.mxu1 %v4129_v38 }
 0x5cc   :  { %3727 = vmatpush3.bf16.msra.mxu1 %v4129_v38 }
 0x5cd   :  { %3728 = vmatprep.subr.bf16.mxu1 %v4130_v40 }
 0x5cf   :  { %3697 = vmatmul.mubr.msk.bf16.gmra.mrb[36].mxu1 %vm247_vm1, %v4453_v50  ;;  %v4134_v50 = vld [vmem:[%s5075_s5 + $0x30] sm:$0xff]  }
 0x5d0   :  { %3729 = vmatpush3.bf16.msra.mxu1 %v4130_v40 }
 0x5d1   :  { %3730 = vmatprep.subr.bf16.mxu1 %v4131_v41 }
 0x5d4   :  { %3731 = vmatpush3.bf16.msra.mxu1 %v4131_v41 }
 0x5d5   :  { %3732 = vmatprep.subr.bf16.mxu1 %v4132_v48 }
 0x5d8   :  { %3733 = vmatpush3.bf16.msra.mxu1 %v4132_v48 }
 0x5d9   :  { %3734 = vmatprep.subr.bf16.mxu1 %v4133_v42 }
 0x5dc   :  { %3735 = vmatpush3.bf16.msra.mxu1 %v4133_v42 }
 0x5dd   :  { %3736 = vmatprep.subr.bf16.mxu1 %v4134_v50 }
 0x5e0   :  { %3737 = vmatpush3.bf16.msra.mxu1 %v4134_v50 }
 0x5e1   :  { %3738 = vmatprep.subr.bf16.mxu1 %v4135_v56 }
 0x5e4   :  { %3739 = vmatpush3.bf16.msra.mxu1 %v4135_v56 }
 0x61b   :  { %v827_v49 = vpop.trf.xlu1 }
 0x61c   :  { %3668 = vmatprep.mubr.msk.bf16.mxu0 %vm247_vm1, %v827_v49 }
 0x61d   :  { %v1053_v57 = vpop.trf.xlu0 }
 0x61f   :  { %v828_v43 = vpop.trf.xlu1 }
 0x620   :  { %3669 = vmatmul.mubr.msk.bf16.vlgmr.msra.gmra.mrb[8].mxu0 %vm247_vm1, %v828_v43 }
 0x621   :  { %v1054_v63 = vpop.trf.xlu0 }
 0x623   :  { %v829_v45 = vpop.trf.xlu1 }
 0x624   :  { %3672 = vmatprep.mubr.msk.bf16.mxu0 %vm247_vm1, %v829_v45 }
 0x625   :  { %v1055_v7 = vpop.trf.xlu0 }
 0x627   :  { %v830_v47 = vpop.trf.xlu1 }
 0x628   :  { %3673 = vmatmul.mubr.msk.bf16.gmra.mrb[12].mxu0 %vm247_vm1, %v830_v47 }
 0x629   :  { %v1056_v8 = vpop.trf.xlu0 }
 0x62b   :  { %v831_v52 = vpop.trf.xlu1 }
 0x62c   :  { %3676 = vmatprep.mubr.msk.bf16.mxu0 %vm247_vm1, %v831_v52 }
 0x62d   :  { %v1057_v9 = vpop.trf.xlu0 }
 0x62f   :  { %v832_v53 = vpop.trf.xlu1 }
 0x630   :  { %3677 = vmatmul.mubr.msk.bf16.gmra.mrb[16].mxu0 %vm247_vm1, %v832_v53 }
 0x631   :  { %v1058_v10 = vpop.trf.xlu0 }
 0x633   :  { %v833_v54 = vpop.trf.xlu1 }
 0x634   :  { %3680 = vmatprep.mubr.msk.bf16.mxu0 %vm247_vm1, %v833_v54 }
 0x635   :  { %v1059_v11 = vpop.trf.xlu0 }
 0x637   :  { %v834_v55 = vpop.trf.xlu1 }
 0x638   :  { %3681 = vmatmul.mubr.msk.bf16.gmra.mrb[20].mxu0 %vm247_vm1, %v834_v55 }
 0x639   :  { %3708 = vmatprep.mubr.msk.bf16.mxu0 %vm247_vm1, %v1053_v57  ;;  %v1060_v12 = vpop.trf.xlu0 }
 0x69a   :  { %v3694_v14 = vpop.f32.mrb[32].mxu1 }
 0x69b   :  { %v1010_v58 = vpop.f32.mrb[33].mxu1 }
 0x69c   :  { %v3695_v59 = vpop.f32.mrb[34].mxu1 }
 0x69d   :  { %v1042_v60 = vpack.c.bf16 %v3695_v59, %v3694_v14  ;;  %v1013_v61 = vpop.f32.mrb[35].mxu1 }
 0x69e   :  { %v1041_v62 = vpack.c.bf16 %v1013_v61, %v1010_v58 }
 0x6a0   :  { %3700 = vmatprep.subr.bf16.mxu0 %v1041_v62 }
 0x6a1   :  { %3701 = vmatpush3.bf16.msra.mxu0 %v1041_v62  ;;  %v4136_v62 = vld [vmem:[%s5076_s6] sm:$0xff]  }
 0x6a2   :  { %3702 = vmatprep.subr.bf16.mxu0 %v1042_v60  ;;  %v3698_v0 = vpop.f32.mrb[36].mxu1  ;;  %3788 = vmatprep.subr.bf16.mxu1 %v4136_v62 }
 0x6a3   :  { %v1026_v1 = vpop.f32.mrb[37].mxu1 }
 0x6a4   :  { %v3699_v2 = vpop.f32.mrb[38].mxu1 }
 0x6a5   :  { %3703 = vmatpush3.bf16.msra.mxu0 %v1042_v60  ;;  %v1044_v3 = vpack.c.bf16 %v3699_v2, %v3698_v0  ;;  %v1029_v5 = vpop.f32.mrb[39].mxu1 }
 0x6a6   :  { %v1043_v6 = vpack.c.bf16 %v1029_v5, %v1026_v1  ;;  %v4137_v1 = vld [vmem:[%s5076_s6 + $0x8] sm:$0xff]  }
 0x6a8   :  { %3704 = vmatprep.subr.bf16.mxu0 %v1043_v6 }
 0x6a9   :  { %3705 = vmatpush3.bf16.msra.mxu0 %v1043_v6 }
 0x6aa   :  { %3706 = vmatprep.subr.bf16.mxu0 %v1044_v3 }
 0x6ad   :  { %3707 = vmatpush3.bf16.msra.mxu0 %v1044_v3  ;;  %v4138_v3 = vld [vmem:[%s5076_s6 + $0x10] sm:$0xff]  }
 0x6b0   :  { %3709 = vmatmul.mubr.msk.bf16.vlgmr.msra.gmra.mrb[24].mxu0 %vm247_vm1, %v1054_v63 }
 0x6b1   :  { %3712 = vmatprep.mubr.msk.bf16.mxu0 %vm247_vm1, %v1055_v7 }
 0x6b8   :  { %3713 = vmatmul.mubr.msk.bf16.gmra.mrb[28].mxu0 %vm247_vm1, %v1056_v8  ;;  %v4139_v8 = vld [vmem:[%s5076_s6 + $0x18] sm:$0xff]  }
 0x6b9   :  { %3716 = vmatprep.mubr.msk.bf16.mxu0 %vm247_vm1, %v1057_v9 }
 0x6c0   :  { %3717 = vmatmul.mubr.msk.bf16.gmra.mrb[32].mxu0 %vm247_vm1, %v1058_v10 }
 0x6c1   :  { %3720 = vmatprep.mubr.msk.bf16.mxu0 %vm247_vm1, %v1059_v11 }
 0x6c8   :  { %3721 = vmatmul.mubr.msk.bf16.gmra.mrb[36].mxu0 %vm247_vm1, %v1060_v12  ;;  %v4140_v12 = vld [vmem:[%s5076_s6 + $0x20] sm:$0xff]  }
 0x6f3   :  { %v3670_v13 = vpop.f32.mrb[8].mxu0 }
 0x6f4   :  { %v893_v15 = vpop.f32.mrb[9].mxu0 }
 0x6f5   :  { %v3671_v17 = vpop.f32.mrb[10].mxu0 }
 0x6f6   :  { %v957_v19 = vpack.c.bf16 %v3671_v17, %v3670_v13  ;;  %v896_v24 = vpop.f32.mrb[11].mxu0 }
 0x6f7   :  { %v956_v26 = vpack.c.bf16 %v896_v24, %v893_v15 }
 0x6f9   :  { %3740 = vmatprep.mubr.bf16.mxu1 %v956_v26 }
 0x6fa   :  { %3741 = vmatmul.mubr.bf16.vlgmr.msra.gmra.mrb[40].mxu1 %v957_v19  ;;  %v4141_v19 = vld [vmem:[%s5076_s6 + $0x28] sm:$0xff]  }
 0x6fb   :  { %v3674_v28 = vpop.f32.mrb[12].mxu0  ;;  %3789 = vmatpush3.bf16.msra.mxu1 %v4136_v62  ;;  %v4142_v62 = vld [vmem:[%s5076_s6 + $0x30] sm:$0xff]  }
 0x6fc   :  { %v909_v29 = vpop.f32.mrb[13].mxu0  ;;  %3790 = vmatprep.subr.bf16.mxu1 %v4137_v1 }
 0x6fd   :  { %v3675_v32 = vpop.f32.mrb[14].mxu0 }
 0x6fe   :  { %v959_v33 = vpack.c.bf16 %v3675_v32, %v3674_v28  ;;  %v912_v34 = vpop.f32.mrb[15].mxu0 }
 0x6ff   :  { %v958_v36 = vpack.c.bf16 %v912_v34, %v909_v29  ;;  %3791 = vmatpush3.bf16.msra.mxu1 %v4137_v1 }
 0x700   :  { %3792 = vmatprep.subr.bf16.mxu1 %v4138_v3 }
 0x701   :  { %3744 = vmatprep.mubr.bf16.mxu1 %v958_v36 }
 0x702   :  { %3745 = vmatmul.mubr.bf16.gmra.mrb[44].mxu1 %v959_v33 }
 0x703   :  { %v3678_v38 = vpop.f32.mrb[16].mxu0  ;;  %3793 = vmatpush3.bf16.msra.mxu1 %v4138_v3 }
 0x704   :  { %v925_v40 = vpop.f32.mrb[17].mxu0  ;;  %3794 = vmatprep.subr.bf16.mxu1 %v4139_v8 }
 0x705   :  { %v3679_v41 = vpop.f32.mrb[18].mxu0 }
 0x706   :  { %v961_v48 = vpack.c.bf16 %v3679_v41, %v3678_v38  ;;  %v928_v49 = vpop.f32.mrb[19].mxu0 }
 0x707   :  { %v960_v42 = vpack.c.bf16 %v928_v49, %v925_v40  ;;  %3795 = vmatpush3.bf16.msra.mxu1 %v4139_v8 }
 0x708   :  { %3796 = vmatprep.subr.bf16.mxu1 %v4140_v12 }
 0x709   :  { %3748 = vmatprep.mubr.bf16.mxu1 %v960_v42 }
 0x70a   :  { %3749 = vmatmul.mubr.bf16.gmra.mrb[48].mxu1 %v961_v48 }
 0x70b   :  { %v3682_v43 = vpop.f32.mrb[20].mxu0  ;;  %3797 = vmatpush3.bf16.msra.mxu1 %v4140_v12 }
 0x70c   :  { %v941_v50 = vpop.f32.mrb[21].mxu0  ;;  %3798 = vmatprep.subr.bf16.mxu1 %v4141_v19 }
 0x70d   :  { %v3683_v45 = vpop.f32.mrb[22].mxu0 }
 0x70e   :  { %v963_v47 = vpack.c.bf16 %v3683_v45, %v3682_v43  ;;  %v944_v52 = vpop.f32.mrb[23].mxu0 }
 0x70f   :  { %v962_v53 = vpack.c.bf16 %v944_v52, %v941_v50  ;;  %3799 = vmatpush3.bf16.msra.mxu1 %v4141_v19 }
 0x710   :  { %3800 = vmatprep.subr.bf16.mxu1 %v4142_v62 }
 0x711   :  { %3752 = vmatprep.mubr.bf16.mxu1 %v962_v53 }
 0x712   :  { %3753 = vmatmul.mubr.bf16.gmra.mrb[52].mxu1 %v963_v47 }
 0x713   :  { %3801 = vmatpush3.bf16.msra.mxu1 %v4142_v62 }
 0x783   :  { %v3710_v54 = vpop.f32.mrb[24].mxu0 }
 0x784   :  { %v1119_v55 = vpop.f32.mrb[25].mxu0 }
 0x785   :  { %v3711_v56 = vpop.f32.mrb[26].mxu0 }
 0x786   :  { %v4629_v57 = vpack.c.bf16 %v3711_v56, %v3710_v54  ;;  %v1122_v14 = vpop.f32.mrb[27].mxu0 }
 0x787   :  { %v4631_v58 = vpack.c.bf16 %v1122_v14, %v1119_v55 }
 0x789   :  { %3772 = vmatprep.mubr.bf16.mxu0 %v4631_v58 }
 0x78b   :  { %v3714_v59 = vpop.f32.mrb[28].mxu0 }
 0x78c   :  { %v1135_v60 = vpop.f32.mrb[29].mxu0 }
 0x78d   :  { %v3715_v61 = vpop.f32.mrb[30].mxu0 }
 0x78e   :  { %v4637_v63 = vpack.c.bf16 %v3715_v61, %v3714_v59  ;;  %v1138_v0 = vpop.f32.mrb[31].mxu0 }
 0x78f   :  { %v4642_v2 = vpack.c.bf16 %v1138_v0, %v1135_v60  ;;  %v4143_v0 = vld [vmem:[%s5076_s6 + $0x38] sm:$0xff]  }
 0x790   :  { %3802 = vmatprep.subr.bf16.mxu1 %v4143_v0 }
 0x791   :  { %3803 = vmatpush3.bf16.msra.mxu1 %v4143_v0 }
 0x793   :  { %v3718_v5 = vpop.f32.mrb[32].mxu0 }
 0x794   :  { %v1151_v6 = vpop.f32.mrb[33].mxu0 }
 0x795   :  { %v3719_v7 = vpop.f32.mrb[34].mxu0 }
 0x796   :  { %v4650_v9 = vpack.c.bf16 %v3719_v7, %v3718_v5  ;;  %v1154_v10 = vpop.f32.mrb[35].mxu0 }
 0x797   :  { %v4652_v11 = vpack.c.bf16 %v1154_v10, %v1151_v6 }
 0x79b   :  { %v3722_v13 = vpop.f32.mrb[36].mxu0 }
 0x79c   :  { %v1167_v15 = vpop.f32.mrb[37].mxu0 }
 0x79d   :  { %v3723_v17 = vpop.f32.mrb[38].mxu0 }
 0x79e   :  { %v4660_v24 = vpack.c.bf16 %v3723_v17, %v3722_v13  ;;  %v1170_v26 = vpop.f32.mrb[39].mxu0 }
 0x79f   :  { %v4662_v28 = vpack.c.bf16 %v1170_v26, %v1167_v15 }
 0x7cd   :  { %v3742_v29 = vpop.f32.mrb[40].mxu1 }
 0x7ce   :  { %v1288_v32 = vpop.f32.mrb[41].mxu1 }
 0x7cf   :  { %v3743_v33 = vpop.f32.mrb[42].mxu1 }
 0x7d0   :  { %v1352_v34 = vpack.c.bf16 %v3743_v33, %v3742_v29  ;;  %v1291_v36 = vpop.f32.mrb[43].mxu1 }
 0x7d1   :  { %v1351_v38 = vpack.c.bf16 %v1291_v36, %v1288_v32 }
 0x7d3   :  { %3756 = vmatprep.subr.bf16.mxu0 %v1351_v38 }
 0x7d4   :  { %3757 = vmatpush3.bf16.msra.mxu0 %v1351_v38 }
 0x7d5   :  { %v3746_v40 = vpop.f32.mrb[44].mxu1  ;;  %3758 = vmatprep.subr.bf16.mxu0 %v1352_v34 }
 0x7d6   :  { %v1304_v41 = vpop.f32.mrb[45].mxu1 }
 0x7d7   :  { %v3747_v48 = vpop.f32.mrb[46].mxu1 }
 0x7d8   :  { %v1354_v49 = vpack.c.bf16 %v3747_v48, %v3746_v40  ;;  %v1307_v42 = vpop.f32.mrb[47].mxu1  ;;  %3759 = vmatpush3.bf16.msra.mxu0 %v1352_v34 }
 0x7d9   :  { %v1353_v43 = vpack.c.bf16 %v1307_v42, %v1304_v41 }
 0x7db   :  { %3760 = vmatprep.subr.bf16.mxu0 %v1353_v43 }
 0x7dc   :  { %3761 = vmatpush3.bf16.msra.mxu0 %v1353_v43 }
 0x7dd   :  { %v3750_v50 = vpop.f32.mrb[48].mxu1  ;;  %3762 = vmatprep.subr.bf16.mxu0 %v1354_v49 }
 0x7de   :  { %v1320_v45 = vpop.f32.mrb[49].mxu1 }
 0x7df   :  { %v3751_v47 = vpop.f32.mrb[50].mxu1 }
 0x7e0   :  { %v1356_v52 = vpack.c.bf16 %v3751_v47, %v3750_v50  ;;  %v1323_v53 = vpop.f32.mrb[51].mxu1  ;;  %3763 = vmatpush3.bf16.msra.mxu0 %v1354_v49 }
 0x7e1   :  { %v1355_v54 = vpack.c.bf16 %v1323_v53, %v1320_v45 }
 0x7e3   :  { %3764 = vmatprep.subr.bf16.mxu0 %v1355_v54 }
 0x7e4   :  { %3765 = vmatpush3.bf16.msra.mxu0 %v1355_v54 }
 0x7e5   :  { %v3754_v55 = vpop.f32.mrb[52].mxu1  ;;  %3766 = vmatprep.subr.bf16.mxu0 %v1356_v52 }
 0x7e6   :  { %v1336_v56 = vpop.f32.mrb[53].mxu1 }
 0x7e7   :  { %v3755_v14 = vpop.f32.mrb[54].mxu1 }
 0x7e8   :  { %v1358_v59 = vpack.c.bf16 %v3755_v14, %v3754_v55  ;;  %v1339_v60 = vpop.f32.mrb[55].mxu1  ;;  %3767 = vmatpush3.bf16.msra.mxu0 %v1356_v52 }
 0x7e9   :  { %v1357_v61 = vpack.c.bf16 %v1339_v60, %v1336_v56 }
 0x7eb   :  { %3768 = vmatprep.subr.bf16.mxu0 %v1357_v61 }
 0x7ec   :  { %3769 = vmatpush3.bf16.msra.mxu0 %v1357_v61 }
 0x7ed   :  { %3770 = vmatprep.subr.bf16.mxu0 %v1358_v59 }
 0x7f0   :  { %3771 = vmatpush3.bf16.msra.mxu0 %v1358_v59 }
 0x7f3   :  { %3773 = vmatmul.mubr.bf16.vlgmr.msra.gmra.mrb[40].mxu0 %v4629_v57 }
 0x7f4   :  { %3776 = vmatprep.mubr.bf16.mxu0 %v4642_v2 }
 0x7fb   :  { %3777 = vmatmul.mubr.bf16.gmra.mrb[44].mxu0 %v4637_v63 }
 0x7fc   :  { %3780 = vmatprep.mubr.bf16.mxu0 %v4652_v11 }
 0x803   :  { %3781 = vmatmul.mubr.bf16.gmra.mrb[48].mxu0 %v4650_v9 }
 0x804   :  { %3784 = vmatprep.mubr.bf16.mxu0 %v4662_v28 }
 0x80b   :  { %3785 = vmatmul.mubr.bf16.gmra.mrb[52].mxu0 %v4660_v24 }
 0x80c   :  { %3836 = vmatprep.mubr.bf16.mxu0 %v4631_v58 }
 0x8c6   :  { %v3774_v1 = vpop.f32.mrb[40].mxu0 }
 0x8c7   :  { %v1474_v3 = vmul.f32 0.2, %v3774_v1  ;;  %v1393_v5 = vpop.f32.mrb[41].mxu0  ;;  %vm1458_vm4 = vcmp.gt.f32.partialorder %v3774_v1, 0.0 }
 0x8c8   :  { %v1472_v6 = vmul.f32 0.2, %v1393_v5  ;;  %v3775_v7 = vpop.f32.mrb[42].mxu0  ;;  %vm1456_vm5 = vcmp.gt.f32.partialorder %v1393_v5, 0.0 }
 0x8c9   :  { %vm1459_vm6 = vcmp.gt.f32.partialorder %v3775_v7, 0.0  ;;  %v1475_v8 = vmul.f32 0.2, %v3775_v7  ;;  %v1396_v10 = vpop.f32.mrb[43].mxu0  ;;  %v1490_v13 = vsel %vm1458_vm4, %v3774_v1, %v1474_v3 }
 0x8ca   :  { %vm1457_vm7 = vcmp.gt.f32.partialorder %v1396_v10, 0.0  ;;  %v1473_v12 = vmul.f32 0.2, %v1396_v10  ;;  %v1488_v17 = vsel %vm1456_vm5, %v1393_v5, %v1472_v6 }
 0x8cb   :  { %v1491_v15 = vsel %vm1459_vm6, %v3775_v7, %v1475_v8 }
 0x8cc   :  { %v1505_v19 = vpack.c.bf16 %v1491_v15, %v1490_v13  ;;  %v1489_v26 = vsel %vm1457_vm7, %v1396_v10, %v1473_v12 }
 0x8cd   :  { %v1504_v29 = vpack.c.bf16 %v1489_v26, %v1488_v17 }
 0x8ce   :  { %v3778_v32 = vpop.f32.mrb[44].mxu0 }
 0x8cf   :  { %v1478_v33 = vmul.f32 0.2, %v3778_v32  ;;  %v1409_v34 = vpop.f32.mrb[45].mxu0  ;;  %3804 = vmatprep.mubr.bf16.mxu1 %v1504_v29  ;;  %vm1462_vm8 = vcmp.gt.f32.partialorder %v3778_v32, 0.0 }
 0x8d0   :  { %v1476_v36 = vmul.f32 0.2, %v1409_v34  ;;  %v3779_v38 = vpop.f32.mrb[46].mxu0  ;;  %3805 = vmatmul.mubr.bf16.vlgmr.msra.gmra.mrb[56].mxu1 %v1505_v19  ;;  %vm1460_vm9 = vcmp.gt.f32.partialorder %v1409_v34, 0.0 }
 0x8d1   :  { %vm1463_vm10 = vcmp.gt.f32.partialorder %v3779_v38, 0.0  ;;  %v1479_v40 = vmul.f32 0.2, %v3779_v38  ;;  %v1412_v41 = vpop.f32.mrb[47].mxu0  ;;  %v1494_v49 = vsel %vm1462_vm8, %v3778_v32, %v1478_v33 }
 0x8d2   :  { %vm1461_vm11 = vcmp.gt.f32.partialorder %v1412_v41, 0.0  ;;  %v1477_v48 = vmul.f32 0.2, %v1412_v41  ;;  %v1492_v43 = vsel %vm1460_vm9, %v1409_v34, %v1476_v36  ;;  %v4144_v36 = vld [vmem:[%s5077_s8] sm:$0xff]  }
 0x8d3   :  { %v1495_v42 = vsel %vm1463_vm10, %v3779_v38, %v1479_v40  ;;  %v4145_v38 = vld [vmem:[%s5077_s8 + $0x8] sm:$0xff]   ;;  %3852 = vmatprep.subr.bf16.mxu1 %v4144_v36  ;;  %v4146_v40 = vld [vmem:[%s5077_s8 + $0x10] sm:$0xff]  }
 0x8d4   :  { %v1493_v50 = vsel %vm1461_vm11, %v1412_v41, %v1477_v48  ;;  %v1507_v45 = vpack.c.bf16 %v1495_v42, %v1494_v49  ;;  %3853 = vmatpush3.bf16.msra.mxu1 %v4144_v36  ;;  %v4147_v41 = vld [vmem:[%s5077_s8 + $0x18] sm:$0xff]   ;;  %v4148_v48 = vld [vmem:[%s5077_s8 + $0x20] sm:$0xff]   ;;  %v4149_v49 = vld [vmem:[%s5077_s8 + $0x28] sm:$0xff]  }
 0x8d5   :  { %v1506_v47 = vpack.c.bf16 %v1493_v50, %v1492_v43  ;;  %3854 = vmatprep.subr.bf16.mxu1 %v4145_v38 }
 0x8d6   :  { %v3782_v52 = vpop.f32.mrb[48].mxu0 }
 0x8d7   :  { %v1482_v53 = vmul.f32 0.2, %v3782_v52  ;;  %v1425_v54 = vpop.f32.mrb[49].mxu0  ;;  %3808 = vmatprep.mubr.bf16.mxu1 %v1506_v47  ;;  %vm1466_vm12 = vcmp.gt.f32.partialorder %v3782_v52, 0.0 }
 0x8d8   :  { %v1480_v55 = vmul.f32 0.2, %v1425_v54  ;;  %v3783_v56 = vpop.f32.mrb[50].mxu0  ;;  %3809 = vmatmul.mubr.bf16.gmra.mrb[60].mxu1 %v1507_v45  ;;  %vm1464_vm13 = vcmp.gt.f32.partialorder %v1425_v54, 0.0 }
 0x8d9   :  { %vm1467_vm14 = vcmp.gt.f32.partialorder %v3783_v56, 0.0  ;;  %v1483_v14 = vmul.f32 0.2, %v3783_v56  ;;  %v1428_v59 = vpop.f32.mrb[51].mxu0  ;;  %v1498_v61 = vsel %vm1466_vm12, %v3782_v52, %v1482_v53  ;;  %3855 = vmatpush3.bf16.msra.mxu1 %v4145_v38 }
 0x8da   :  { %vm1465_vm15 = vcmp.gt.f32.partialorder %v1428_v59, 0.0  ;;  %v1481_v60 = vmul.f32 0.2, %v1428_v59  ;;  %v1496_v0 = vsel %vm1464_vm13, %v1425_v54, %v1480_v55  ;;  %3856 = vmatprep.subr.bf16.mxu1 %v4146_v40 }
 0x8db   :  { %v1499_v62 = vsel %vm1467_vm14, %v3783_v56, %v1483_v14 }
 0x8dc   :  { %v1497_v1 = vsel %vm1465_vm15, %v1428_v59, %v1481_v60  ;;  %v1509_v3 = vpack.c.bf16 %v1499_v62, %v1498_v61 }
 0x8dd   :  { %v1508_v5 = vpack.c.bf16 %v1497_v1, %v1496_v0  ;;  %3857 = vmatpush3.bf16.msra.mxu1 %v4146_v40 }
 0x8de   :  { %v3786_v6 = vpop.f32.mrb[52].mxu0  ;;  %3858 = vmatprep.subr.bf16.mxu1 %v4147_v41 }
 0x8df   :  { %v1486_v7 = vmul.f32 0.2, %v3786_v6  ;;  %v1441_v8 = vpop.f32.mrb[53].mxu0  ;;  %3812 = vmatprep.mubr.bf16.mxu1 %v1508_v5  ;;  %vm1470_vm0 = vcmp.gt.f32.partialorder %v3786_v6, 0.0 }
 0x8e0   :  { %v1484_v10 = vmul.f32 0.2, %v1441_v8  ;;  %v3787_v12 = vpop.f32.mrb[54].mxu0  ;;  %3813 = vmatmul.mubr.bf16.gmra.mrb[64].mxu1 %v1509_v3  ;;  %vm1468_vm2 = vcmp.gt.f32.partialorder %v1441_v8, 0.0 }
 0x8e1   :  { %vm1471_vm3 = vcmp.gt.f32.partialorder %v3787_v12, 0.0  ;;  %v1487_v13 = vmul.f32 0.2, %v3787_v12  ;;  %v1444_v15 = vpop.f32.mrb[55].mxu0  ;;  %v1502_v19 = vsel %vm1470_vm0, %v3786_v6, %v1486_v7  ;;  %3859 = vmatpush3.bf16.msra.mxu1 %v4147_v41 }
 0x8e2   :  { %vm1469_vm4 = vcmp.gt.f32.partialorder %v1444_v15, 0.0  ;;  %v1485_v17 = vmul.f32 0.2, %v1444_v15  ;;  %v1500_v29 = vsel %vm1468_vm2, %v1441_v8, %v1484_v10  ;;  %3860 = vmatprep.subr.bf16.mxu1 %v4148_v48 }
 0x8e3   :  { %v1503_v26 = vsel %vm1471_vm3, %v3787_v12, %v1487_v13  ;;  %v4150_v13 = vld [vmem:[%s5077_s8 + $0x30] sm:$0xff]  }
 0x8e4   :  { %v1501_v32 = vsel %vm1469_vm4, %v1444_v15, %v1485_v17  ;;  %v1511_v33 = vpack.c.bf16 %v1503_v26, %v1502_v19  ;;  %v4151_v15 = vld [vmem:[%s5077_s8 + $0x38] sm:$0xff]  }
 0x8e5   :  { %v1510_v34 = vpack.c.bf16 %v1501_v32, %v1500_v29  ;;  %3861 = vmatpush3.bf16.msra.mxu1 %v4148_v48 }
 0x8e6   :  { %3862 = vmatprep.subr.bf16.mxu1 %v4149_v49 }
 0x8e7   :  { %3816 = vmatprep.mubr.bf16.mxu1 %v1510_v34 }
 0x8e8   :  { %3817 = vmatmul.mubr.bf16.gmra.mrb[68].mxu1 %v1511_v33 }
 0x8e9   :  { %3863 = vmatpush3.bf16.msra.mxu1 %v4149_v49 }
 0x8ea   :  { %3864 = vmatprep.subr.bf16.mxu1 %v4150_v13 }
 0x8ed   :  { %3865 = vmatpush3.bf16.msra.mxu1 %v4150_v13 }
 0x8ee   :  { %3866 = vmatprep.subr.bf16.mxu1 %v4151_v15 }
 0x8f1   :  { %3867 = vmatpush3.bf16.msra.mxu1 %v4151_v15 }
 0x9a3   :  { %v3806_v42 = vpop.f32.mrb[56].mxu1 }
 0x9a4   :  { %v1610_v43 = vpop.f32.mrb[57].mxu1 }
 0x9a5   :  { %v3807_v50 = vpop.f32.mrb[58].mxu1 }
 0x9a6   :  { %v1674_v45 = vpack.c.bf16 %v3807_v50, %v3806_v42  ;;  %v1613_v47 = vpop.f32.mrb[59].mxu1 }
 0x9a7   :  { %v1673_v52 = vpack.c.bf16 %v1613_v47, %v1610_v43 }
 0x9a9   :  { %3820 = vmatprep.subr.bf16.mxu0 %v1673_v52 }
 0x9aa   :  { %3821 = vmatpush3.bf16.msra.mxu0 %v1673_v52 }
 0x9ab   :  { %v3810_v53 = vpop.f32.mrb[60].mxu1  ;;  %3822 = vmatprep.subr.bf16.mxu0 %v1674_v45 }
 0x9ac   :  { %v1626_v54 = vpop.f32.mrb[61].mxu1 }
 0x9ad   :  { %v3811_v55 = vpop.f32.mrb[62].mxu1 }
 0x9ae   :  { %v1676_v56 = vpack.c.bf16 %v3811_v55, %v3810_v53  ;;  %v1629_v14 = vpop.f32.mrb[63].mxu1  ;;  %3823 = vmatpush3.bf16.msra.mxu0 %v1674_v45 }
 0x9af   :  { %v1675_v59 = vpack.c.bf16 %v1629_v14, %v1626_v54 }
 0x9b1   :  { %3824 = vmatprep.subr.bf16.mxu0 %v1675_v59 }
 0x9b2   :  { %3825 = vmatpush3.bf16.msra.mxu0 %v1675_v59 }
 0x9b3   :  { %v3814_v60 = vpop.f32.mrb[64].mxu1  ;;  %3826 = vmatprep.subr.bf16.mxu0 %v1676_v56 }
 0x9b4   :  { %v1642_v61 = vpop.f32.mrb[65].mxu1 }
 0x9b5   :  { %v3815_v62 = vpop.f32.mrb[66].mxu1 }
 0x9b6   :  { %v1678_v0 = vpack.c.bf16 %v3815_v62, %v3814_v60  ;;  %v1645_v1 = vpop.f32.mrb[67].mxu1  ;;  %3827 = vmatpush3.bf16.msra.mxu0 %v1676_v56 }
 0x9b7   :  { %v1677_v3 = vpack.c.bf16 %v1645_v1, %v1642_v61 }
 0x9b9   :  { %3828 = vmatprep.subr.bf16.mxu0 %v1677_v3 }
 0x9ba   :  { %3829 = vmatpush3.bf16.msra.mxu0 %v1677_v3 }
 0x9bb   :  { %v3818_v5 = vpop.f32.mrb[68].mxu1  ;;  %3830 = vmatprep.subr.bf16.mxu0 %v1678_v0 }
 0x9bc   :  { %v1658_v6 = vpop.f32.mrb[69].mxu1 }
 0x9bd   :  { %v3819_v7 = vpop.f32.mrb[70].mxu1 }
 0x9be   :  { %v1680_v8 = vpack.c.bf16 %v3819_v7, %v3818_v5  ;;  %v1661_v10 = vpop.f32.mrb[71].mxu1  ;;  %3831 = vmatpush3.bf16.msra.mxu0 %v1678_v0 }
 0x9bf   :  { %v1679_v12 = vpack.c.bf16 %v1661_v10, %v1658_v6 }
 0x9c1   :  { %3832 = vmatprep.subr.bf16.mxu0 %v1679_v12 }
 0x9c2   :  { %3833 = vmatpush3.bf16.msra.mxu0 %v1679_v12 }
 0x9c3   :  { %3834 = vmatprep.subr.bf16.mxu0 %v1680_v8 }
 0x9c6   :  { %3835 = vmatpush3.bf16.msra.mxu0 %v1680_v8 }
 0x9c9   :  { %3837 = vmatmul.mubr.bf16.vlgmr.msra.gmra.mrb[56].mxu0 %v4629_v57 }
 0x9ca   :  { %3840 = vmatprep.mubr.bf16.mxu0 %v4642_v2 }
 0x9d1   :  { %3841 = vmatmul.mubr.bf16.gmra.mrb[60].mxu0 %v4637_v63 }
 0x9d2   :  { %3844 = vmatprep.mubr.bf16.mxu0 %v4652_v11 }
 0x9d9   :  { %3845 = vmatmul.mubr.bf16.gmra.mrb[64].mxu0 %v4650_v9 }
 0x9da   :  { %3848 = vmatprep.mubr.bf16.mxu0 %v4662_v28 }
 0x9e1   :  { %3849 = vmatmul.mubr.bf16.gmra.mrb[68].mxu0 %v4660_v24 }
 0xa9c   :  { %v3838_v17 = vpop.f32.mrb[56].mxu0 }
 0xa9d   :  { %v1796_v19 = vmul.f32 0.2, %v3838_v17  ;;  %v1715_v26 = vpop.f32.mrb[57].mxu0  ;;  %vm1780_vm5 = vcmp.gt.f32.partialorder %v3838_v17, 0.0 }
 0xa9e   :  { %v1794_v29 = vmul.f32 0.2, %v1715_v26  ;;  %v3839_v32 = vpop.f32.mrb[58].mxu0  ;;  %vm1778_vm6 = vcmp.gt.f32.partialorder %v1715_v26, 0.0 }
 0xa9f   :  { %vm1781_vm7 = vcmp.gt.f32.partialorder %v3839_v32, 0.0  ;;  %v1797_v33 = vmul.f32 0.2, %v3839_v32  ;;  %v1718_v34 = vpop.f32.mrb[59].mxu0  ;;  %v1812_v38 = vsel %vm1780_vm5, %v3838_v17, %v1796_v19 }
 0xaa0   :  { %vm1779_vm8 = vcmp.gt.f32.partialorder %v1718_v34, 0.0  ;;  %v1795_v36 = vmul.f32 0.2, %v1718_v34  ;;  %v1810_v41 = vsel %vm1778_vm6, %v1715_v26, %v1794_v29  ;;  %vm1995_vm6 = vcmp.lt.s32.totalorder %v4544_v51, 16 }
 0xaa1   :  { %v1813_v40 = vsel %vm1781_vm7, %v3839_v32, %v1797_v33 }
 0xaa2   :  { %v4709_v48 = vpack.c.bf16 %v1813_v40, %v1812_v38  ;;  %v1811_v49 = vsel %vm1779_vm8, %v1718_v34, %v1795_v36 }
 0xaa3   :  { %v4711_v42 = vpack.c.bf16 %v1811_v49, %v1810_v41 }
 0xaa4   :  { %v3842_v43 = vpop.f32.mrb[60].mxu0 }
 0xaa5   :  { %v1800_v50 = vmul.f32 0.2, %v3842_v43  ;;  %v1731_v45 = vpop.f32.mrb[61].mxu0  ;;  %3868 = vmatprep.mubr.bf16.mxu1 %v4711_v42  ;;  %3884 = vmatprep.subr.bf16.mxu0 %v4711_v42  ;;  %vm1784_vm9 = vcmp.gt.f32.partialorder %v3842_v43, 0.0 }
 0xaa6   :  { %v1798_v47 = vmul.f32 0.2, %v1731_v45  ;;  %v3843_v52 = vpop.f32.mrb[62].mxu0  ;;  %3869 = vmatmul.mubr.bf16.vlgmr.msra.gmra.mrb[72].mxu1 %v4709_v48  ;;  %3885 = vmatpush3.bf16.msra.mxu0 %v4711_v42  ;;  %vm1782_vm10 = vcmp.gt.f32.partialorder %v1731_v45, 0.0 }
 0xaa7   :  { %vm1785_vm11 = vcmp.gt.f32.partialorder %v3843_v52, 0.0  ;;  %v1801_v53 = vmul.f32 0.2, %v3843_v52  ;;  %v1734_v54 = vpop.f32.mrb[63].mxu0  ;;  %3886 = vmatprep.subr.bf16.mxu0 %v4709_v48  ;;  %v1816_v56 = vsel %vm1784_vm9, %v3842_v43, %v1800_v50 }
 0xaa8   :  { %vm1783_vm12 = vcmp.gt.f32.partialorder %v1734_v54, 0.0  ;;  %v1799_v55 = vmul.f32 0.2, %v1734_v54  ;;  %v1814_v59 = vsel %vm1782_vm10, %v1731_v45, %v1798_v47 }
 0xaa9   :  { %v1817_v14 = vsel %vm1785_vm11, %v3843_v52, %v1801_v53 }
 0xaaa   :  { %v4718_v60 = vpack.c.bf16 %v1817_v14, %v1816_v56  ;;  %v1815_v61 = vsel %vm1783_vm12, %v1734_v54, %v1799_v55  ;;  %3887 = vmatpush3.bf16.msra.mxu0 %v4709_v48 }
 0xaab   :  { %v4721_v62 = vpack.c.bf16 %v1815_v61, %v1814_v59 }
 0xaac   :  { %v3846_v0 = vpop.f32.mrb[64].mxu0 }
 0xaad   :  { %v1804_v1 = vmul.f32 0.2, %v3846_v0  ;;  %v1747_v3 = vpop.f32.mrb[65].mxu0  ;;  %3872 = vmatprep.mubr.bf16.mxu1 %v4721_v62  ;;  %3888 = vmatprep.subr.bf16.mxu0 %v4721_v62  ;;  %vm1788_vm13 = vcmp.gt.f32.partialorder %v3846_v0, 0.0 }
 0xaae   :  { %v1802_v5 = vmul.f32 0.2, %v1747_v3  ;;  %v3847_v6 = vpop.f32.mrb[66].mxu0  ;;  %3873 = vmatmul.mubr.bf16.gmra.mrb[76].mxu1 %v4718_v60  ;;  %3889 = vmatpush3.bf16.msra.mxu0 %v4721_v62  ;;  %vm1786_vm14 = vcmp.gt.f32.partialorder %v1747_v3, 0.0 }
 0xaaf   :  { %vm1789_vm15 = vcmp.gt.f32.partialorder %v3847_v6, 0.0  ;;  %v1805_v7 = vmul.f32 0.2, %v3847_v6  ;;  %v1750_v8 = vpop.f32.mrb[67].mxu0  ;;  %3890 = vmatprep.subr.bf16.mxu0 %v4718_v60  ;;  %v1820_v12 = vsel %vm1788_vm13, %v3846_v0, %v1804_v1 }
 0xab0   :  { %vm1787_vm0 = vcmp.gt.f32.partialorder %v1750_v8, 0.0  ;;  %v1803_v10 = vmul.f32 0.2, %v1750_v8  ;;  %v1818_v15 = vsel %vm1786_vm14, %v1747_v3, %v1802_v5 }
 0xab1   :  { %v1821_v13 = vsel %vm1789_vm15, %v3847_v6, %v1805_v7 }
 0xab2   :  { %v4728_v17 = vpack.c.bf16 %v1821_v13, %v1820_v12  ;;  %v1819_v19 = vsel %vm1787_vm0, %v1750_v8, %v1803_v10  ;;  %3891 = vmatpush3.bf16.msra.mxu0 %v4718_v60 }
 0xab3   :  { %v4731_v26 = vpack.c.bf16 %v1819_v19, %v1818_v15 }
 0xab4   :  { %v3850_v29 = vpop.f32.mrb[68].mxu0 }
 0xab5   :  { %v1808_v32 = vmul.f32 0.2, %v3850_v29  ;;  %v1763_v33 = vpop.f32.mrb[69].mxu0  ;;  %3876 = vmatprep.mubr.bf16.mxu1 %v4731_v26  ;;  %3892 = vmatprep.subr.bf16.mxu0 %v4731_v26  ;;  %vm1792_vm2 = vcmp.gt.f32.partialorder %v3850_v29, 0.0 }
 0xab6   :  { %v1806_v34 = vmul.f32 0.2, %v1763_v33  ;;  %v3851_v36 = vpop.f32.mrb[70].mxu0  ;;  %3877 = vmatmul.mubr.bf16.gmra.mrb[80].mxu1 %v4728_v17  ;;  %3893 = vmatpush3.bf16.msra.mxu0 %v4731_v26  ;;  %vm1790_vm3 = vcmp.gt.f32.partialorder %v1763_v33, 0.0 }
 0xab7   :  { %vm1793_vm4 = vcmp.gt.f32.partialorder %v3851_v36, 0.0  ;;  %v1809_v38 = vmul.f32 0.2, %v3851_v36  ;;  %v1766_v40 = vpop.f32.mrb[71].mxu0  ;;  %3894 = vmatprep.subr.bf16.mxu0 %v4728_v17  ;;  %v1824_v49 = vsel %vm1792_vm2, %v3850_v29, %v1808_v32 }
 0xab8   :  { %vm1791_vm5 = vcmp.gt.f32.partialorder %v1766_v40, 0.0  ;;  %v1807_v41 = vmul.f32 0.2, %v1766_v40  ;;  %v1822_v50 = vsel %vm1790_vm3, %v1763_v33, %v1806_v34 }
 0xab9   :  { %v1825_v43 = vsel %vm1793_vm4, %v3851_v36, %v1809_v38 }
 0xaba   :  { %v4738_v45 = vpack.c.bf16 %v1825_v43, %v1824_v49  ;;  %v1823_v47 = vsel %vm1791_vm5, %v1766_v40, %v1807_v41  ;;  %3895 = vmatpush3.bf16.msra.mxu0 %v4728_v17 }
 0xabb   :  { %v4741_v52 = vpack.c.bf16 %v1823_v47, %v1822_v50 }
 0xabd   :  { %3880 = vmatprep.mubr.bf16.mxu1 %v4741_v52  ;;  %3896 = vmatprep.subr.bf16.mxu0 %v4741_v52 }
 0xabe   :  { %3881 = vmatmul.mubr.bf16.gmra.mrb[84].mxu1 %v4738_v45  ;;  %3897 = vmatpush3.bf16.msra.mxu0 %v4741_v52 }
 0xabf   :  { %3898 = vmatprep.subr.bf16.mxu0 %v4738_v45 }
 0xac2   :  { %3899 = vmatpush3.bf16.msra.mxu0 %v4738_v45 }
 0xb79   :  { %v3870_v53 = vpop.f32.mrb[72].mxu1 }
 0xb7a   :  { %v1932_v54 = vpop.f32.mrb[73].mxu1  ;;  %v1998_v55 = vsel %vm1995_vm6, %v3870_v53, -1e+30 }
 0xb7b   :  { %2016 = vmax.xlane.f32.xlu1 %v1998_v55  ;;  %v3871_v56 = vpop.f32.mrb[74].mxu1  ;;  %v1996_v14 = vsel %vm1995_vm6, %v1932_v54, -1e+30 }
 0xb7c   :  { %v1935_v59 = vpop.f32.mrb[75].mxu1  ;;  %v1999_v61 = vsel %vm1995_vm6, %v3871_v56, -1e+30 }
 0xb7d   :  { %2018 = vmax.xlane.f32.xlu0 %v1999_v61  ;;  %v1997_v0 = vsel %vm1995_vm6, %v1935_v59, -1e+30 }
 0xb7f   :  { %2012 = vmax.xlane.f32.xlu1 %v1996_v14 }
 0xb81   :  { %2014 = vmax.xlane.f32.xlu0 %v1997_v0  ;;  %v3874_v1 = vpop.f32.mrb[76].mxu1 }
 0xb82   :  { %v1948_v3 = vpop.f32.mrb[77].mxu1  ;;  %v2002_v5 = vsel %vm1995_vm6, %v3874_v1, -1e+30 }
 0xb83   :  { %2024 = vmax.xlane.f32.xlu1 %v2002_v5  ;;  %v3875_v6 = vpop.f32.mrb[78].mxu1  ;;  %v2000_v7 = vsel %vm1995_vm6, %v1948_v3, -1e+30 }
 0xb84   :  { %v1951_v8 = vpop.f32.mrb[79].mxu1  ;;  %v2003_v10 = vsel %vm1995_vm6, %v3875_v6, -1e+30 }
 0xb85   :  { %2026 = vmax.xlane.f32.xlu0 %v2003_v10  ;;  %v2001_v12 = vsel %vm1995_vm6, %v1951_v8, -1e+30 }
 0xb87   :  { %2020 = vmax.xlane.f32.xlu1 %v2000_v7 }
 0xb89   :  { %2022 = vmax.xlane.f32.xlu0 %v2001_v12  ;;  %v3878_v13 = vpop.f32.mrb[80].mxu1 }
 0xb8a   :  { %v1964_v15 = vpop.f32.mrb[81].mxu1  ;;  %v2006_v19 = vsel %vm1995_vm6, %v3878_v13, -1e+30 }
 0xb8b   :  { %2032 = vmax.xlane.f32.xlu1 %v2006_v19  ;;  %v3879_v29 = vpop.f32.mrb[82].mxu1  ;;  %v4770_v32 = vsel %vm1995_vm6, %v1964_v15, -1e+30 }
 0xb8c   :  { %v1967_v33 = vpop.f32.mrb[83].mxu1  ;;  %v4774_v34 = vsel %vm1995_vm6, %v3879_v29, -1e+30 }
 0xb8d   :  { %2034 = vmax.xlane.f32.xlu0 %v4774_v34  ;;  %v4779_v36 = vsel %vm1995_vm6, %v1967_v33, -1e+30 }
 0xb8f   :  { %2028 = vmax.xlane.f32.xlu1 %v4770_v32 }
 0xb91   :  { %2030 = vmax.xlane.f32.xlu0 %v4779_v36  ;;  %v3882_v38 = vpop.f32.mrb[84].mxu1 }
 0xb92   :  { %v1980_v40 = vpop.f32.mrb[85].mxu1  ;;  %v4785_v41 = vsel %vm1995_vm6, %v3882_v38, -1e+30 }
 0xb93   :  { %v3883_v49 = vpop.f32.mrb[86].mxu1  ;;  %v4789_v43 = vsel %vm1995_vm6, %v1980_v40, -1e+30 }
 0xb94   :  { %2036 = vmax.xlane.f32.xlu1 %v4789_v43  ;;  %v1983_v50 = vpop.f32.mrb[87].mxu1  ;;  %v4794_v47 = vsel %vm1995_vm6, %v3883_v49, -1e+30 }
 0xb95   :  { %v4798_v53 = vsel %vm1995_vm6, %v1983_v50, -1e+30 }
 0xb96   :  { %2038 = vmax.xlane.f32.xlu0 %v4798_v53 }
 0xb98   :  { %2040 = vmax.xlane.f32.xlu1 %v4785_v41 }
 0xb9a   :  { %2042 = vmax.xlane.f32.xlu0 %v4794_v47 }
 0xc08   :  { %v2017_v54 = vpop.xlane.xlu1 %2016 }
 0xc09   :  { %v2046_v56 = vsub.f32 %v1998_v55, %v2017_v54 }
 0xc0a   :  { %v2019_v59 = vpop.xlane.xlu0 %2018 }
 0xc0b   :  { %v2064_v1 = vmul.f32 1.442695, %v2046_v56  ;;  %v2047_v3 = vsub.f32 %v1999_v61, %v2019_v59 }
 0xc0c   :  { %v2013_v6 = vpop.xlane.xlu1 %2012 }
 0xc0d   :  { %4208 = vpow2.f32 %v2064_v1  ;;  %v2066_v8 = vmul.f32 1.442695, %v2047_v3  ;;  %v2044_v13 = vsub.f32 %v1996_v14, %v2013_v6 }
 0xc0e   :  { %v2015_v15 = vpop.xlane.xlu0 %2014 }
 0xc0f   :  { %4210 = vpow2.f32 %v2066_v8  ;;  %v2060_v51 = vmul.f32 1.442695, %v2044_v13  ;;  %v2045_v29 = vsub.f32 %v1997_v0, %v2015_v15 }
 0xc10   :  { %v2025_v33 = vpop.xlane.xlu1 %2024 }
 0xc11   :  { %4212 = vpow2.f32 %v2060_v51  ;;  %v2062_v38 = vmul.f32 1.442695, %v2045_v29  ;;  %v2050_v40 = vsub.f32 %v2002_v5, %v2025_v33 }
 0xc12   :  { %v2027_v49 = vpop.xlane.xlu0 %2026 }
 0xc13   :  { %4214 = vpow2.f32 %v2062_v38  ;;  %v2072_v50 = vmul.f32 1.442695, %v2050_v40  ;;  %v2051_v31 = vsub.f32 %v2003_v10, %v2027_v49 }
 0xc14   :  { %v2021_v55 = vpop.xlane.xlu1 %2020 }
 0xc15   :  { %4216 = vpow2.f32 %v2072_v50  ;;  %v2074_v54 = vmul.f32 1.442695, %v2051_v31  ;;  %v2048_v61 = vsub.f32 %v2000_v7, %v2021_v55 }
 0xc16   :  { %v2023_v56 = vpop.xlane.xlu0 %2022 }
 0xc17   :  { %v4803_v59 = vpop.eup %4208  ;;  %4218 = vpow2.f32 %v2074_v54  ;;  %v2068_v14 = vmul.f32 1.442695, %v2048_v61  ;;  %v2049_v1 = vsub.f32 %v2001_v12, %v2023_v56 }
 0xc18   :  { %v2033_v3 = vpop.xlane.xlu1 %2032  ;;  %2096 = vadd.xlane.f32.xlu1 %v4803_v59 }
 0xc19   :  { %v4806_v0 = vpop.eup %4210  ;;  %4220 = vpow2.f32 %v2068_v14  ;;  %v2070_v5 = vmul.f32 1.442695, %v2049_v1  ;;  %v2054_v6 = vsub.f32 %v2006_v19, %v2033_v3 }
 0xc1a   :  { %v2035_v8 = vpop.xlane.xlu0 %2034  ;;  %2098 = vadd.xlane.f32.xlu0 %v4806_v0 }
 0xc1b   :  { %v4809_v10 = vpop.eup %4212  ;;  %4222 = vpow2.f32 %v2070_v5  ;;  %v2080_v31 = vmul.f32 1.442695, %v2054_v6  ;;  %v2055_v7 = vsub.f32 %v4774_v34, %v2035_v8 }
 0xc1c   :  { %v2029_v13 = vpop.xlane.xlu1 %2028  ;;  %2092 = vadd.xlane.f32.xlu1 %v4809_v10 }
 0xc1d   :  { %v4813_v12 = vpop.eup %4214  ;;  %4224 = vpow2.f32 %v2080_v31  ;;  %v2082_v15 = vmul.f32 1.442695, %v2055_v7  ;;  %v2052_v51 = vsub.f32 %v4770_v32, %v2029_v13 }
 0xc1e   :  { %v2031_v29 = vpop.xlane.xlu0 %2030  ;;  %2094 = vadd.xlane.f32.xlu0 %v4813_v12 }
 0xc1f   :  { %v4817_v19 = vpop.eup %4216  ;;  %4226 = vpow2.f32 %v2082_v15  ;;  %v2076_v33 = vmul.f32 1.442695, %v2052_v51  ;;  %v2053_v38 = vsub.f32 %v4779_v36, %v2031_v29 }
 0xc20   :  { %2104 = vadd.xlane.f32.xlu1 %v4817_v19 }
 0xc21   :  { %v4821_v34 = vpop.eup %4218  ;;  %4228 = vpow2.f32 %v2076_v33  ;;  %v2078_v40 = vmul.f32 1.442695, %v2053_v38  ;;  %v2037_v49 = vpop.xlane.xlu1 %2036 }
 0xc22   :  { %v2056_v50 = vsub.f32 %v4789_v43, %v2037_v49  ;;  %2106 = vadd.xlane.f32.xlu0 %v4821_v34 }
 0xc23   :  { %v4825_v32 = vpop.eup %4220  ;;  %4230 = vpow2.f32 %v2078_v40  ;;  %v2039_v55 = vpop.xlane.xlu0 %2038 }
 0xc24   :  { %v2084_v54 = vmul.f32 1.442695, %v2056_v50  ;;  %v2057_v61 = vsub.f32 %v4798_v53, %v2039_v55  ;;  %2100 = vadd.xlane.f32.xlu1 %v4825_v32 }
 0xc25   :  { %v4829_v36 = vpop.eup %4222  ;;  %v2041_v56 = vpop.xlane.xlu1 %2040 }
 0xc26   :  { %4232 = vpow2.f32 %v2084_v54  ;;  %v2086_v14 = vmul.f32 1.442695, %v2057_v61  ;;  %v2058_v1 = vsub.f32 %v4785_v41, %v2041_v56  ;;  %2102 = vadd.xlane.f32.xlu0 %v4829_v36 }
 0xc27   :  { %v4833_v43 = vpop.eup %4224  ;;  %v2043_v3 = vpop.xlane.xlu0 %2042 }
 0xc28   :  { %4234 = vpow2.f32 %v2086_v14  ;;  %v2088_v5 = vmul.f32 1.442695, %v2058_v1  ;;  %v2059_v6 = vsub.f32 %v4794_v47, %v2043_v3  ;;  %2112 = vadd.xlane.f32.xlu1 %v4833_v43 }
 0xc29   :  { %v4837_v53 = vpop.eup %4226 }
 0xc2a   :  { %4236 = vpow2.f32 %v2088_v5  ;;  %v2090_v8 = vmul.f32 1.442695, %v2059_v6  ;;  %2114 = vadd.xlane.f32.xlu0 %v4837_v53 }
 0xc2b   :  { %v4840_v31 = vpop.eup %4228 }
 0xc2c   :  { %4238 = vpow2.f32 %v2090_v8  ;;  %2108 = vadd.xlane.f32.xlu1 %v4840_v31 }
 0xc2d   :  { %v4843_v41 = vpop.eup %4230 }
 0xc2e   :  { %2110 = vadd.xlane.f32.xlu0 %v4843_v41 }
 0xc30   :  { %v4846_v7 = vpop.eup %4232 }
 0xc31   :  { %2116 = vadd.xlane.f32.xlu1 %v4846_v7 }
 0xc32   :  { %v4849_v47 = vpop.eup %4234 }
 0xc33   :  { %2118 = vadd.xlane.f32.xlu0 %v4849_v47 }
 0xc34   :  { %v4852_v13 = vpop.eup %4236 }
 0xc35   :  { %2120 = vadd.xlane.f32.xlu1 %v4852_v13 }
 0xc36   :  { %v4855_v15 = vpop.eup %4238 }
 0xc37   :  { %2122 = vadd.xlane.f32.xlu0 %v4855_v15 }
 0xca5   :  { %v2097_v51 = vpop.xlane.xlu1 %2096 }
 0xca7   :  { %v2099_v29 = vpop.xlane.xlu0 %2098 }
 0xca9   :  { %v2093_v33 = vpop.xlane.xlu1 %2092 }
 0xcaa   :  { %4240 = vrcp.f32 %v2093_v33 }
 0xcab   :  { %4242 = vrcp.f32 %v2099_v29  ;;  %v2095_v38 = vpop.xlane.xlu0 %2094 }
 0xcac   :  { %4244 = vrcp.f32 %v2095_v38 }
 0xcad   :  { %v2105_v40 = vpop.xlane.xlu1 %2104  ;;  %4246 = vrcp.f32 %v2097_v51 }
 0xcaf   :  { %v2107_v49 = vpop.xlane.xlu0 %2106 }
 0xcb1   :  { %v2101_v50 = vpop.xlane.xlu1 %2100 }
 0xcb2   :  { %4248 = vrcp.f32 %v2101_v50 }
 0xcb3   :  { %4250 = vrcp.f32 %v2107_v49  ;;  %v2103_v55 = vpop.xlane.xlu0 %2102 }
 0xcb4   :  { %v4241_v54 = vpop.eup %4240  ;;  %4252 = vrcp.f32 %v2103_v55 }
 0xcb5   :  { %v4243_v61 = vpop.eup %4242  ;;  %v2113_v56 = vpop.xlane.xlu1 %2112  ;;  %4254 = vrcp.f32 %v2105_v40  ;;  %v2125_v3 = vmul.f32 %v4241_v54, %v4809_v10 }
 0xcb6   :  { %v4245_v14 = vpop.eup %4244  ;;  %v2131_v8 = vmul.f32 %v4243_v61, %v4806_v0 }
 0xcb7   :  { %v2115_v1 = vpop.xlane.xlu0 %2114  ;;  %v2127_v5 = vmul.f32 %v4245_v14, %v4813_v12  ;;  %v4247_v6 = vpop.eup %4246 }
 0xcb8   :  { %v2129_v33 = vmul.f32 %v4247_v6, %v4803_v59 }
 0xcb9   :  { %v2109_v51 = vpop.xlane.xlu1 %2108  ;;  %v2156_v29 = vpack.c.bf16 %v2127_v5, %v2125_v3 }
 0xcba   :  { %4256 = vrcp.f32 %v2109_v51  ;;  %v4862_v50 = vpack.c.bf16 %v2131_v8, %v2129_v33 }
 0xcbb   :  { %4258 = vrcp.f32 %v2115_v1  ;;  %2164 = vxpose.xlu1.c.b16.start [1/8] %v2156_v29, 128  ;;  %3932 = vmatprep.mubr.bf16.mxu1 %v2156_v29  ;;  %v2111_v38 = vpop.xlane.xlu0 %2110 }
 0xcbc   :  { %v4249_v49 = vpop.eup %4248  ;;  %4260 = vrcp.f32 %v2111_v38 }
 0xcbd   :  { %v4251_v40 = vpop.eup %4250  ;;  %4262 = vrcp.f32 %v2113_v56  ;;  %v2133_v55 = vmul.f32 %v4249_v49, %v4825_v32 }
 0xcbe   :  { %v4253_v10 = vpop.eup %4252  ;;  %v2117_v12 = vpop.xlane.xlu1 %2116  ;;  %v2139_v61 = vmul.f32 %v4251_v40, %v4821_v34 }
 0xcbf   :  { %v2135_v0 = vmul.f32 %v4253_v10, %v4829_v36  ;;  %2165 = vxpose.xlu1.c.b16.cont [2/8] %v4862_v50, 128  ;;  %v4255_v54 = vpop.eup %4254 }
 0xcc0   :  { %v2119_v59 = vpop.xlane.xlu0 %2118  ;;  %v2137_v1 = vmul.f32 %v4255_v54, %v4817_v19 }
 0xcc1   :  { %4264 = vrcp.f32 %v2119_v59  ;;  %v4868_v14 = vpack.c.bf16 %v2135_v0, %v2133_v55 }
 0xcc2   :  { %4266 = vrcp.f32 %v2117_v12  ;;  %v2121_v3 = vpop.xlane.xlu1 %2120  ;;  %v4872_v36 = vpack.c.bf16 %v2139_v61, %v2137_v1 }
 0xcc3   :  { %2166 = vxpose.xlu1.c.b16.cont [3/8] %v4868_v14, 128 }
 0xcc4   :  { %v4257_v56 = vpop.eup %4256  ;;  %v2123_v5 = vpop.xlane.xlu0 %2122 }
 0xcc5   :  { %v4259_v32 = vpop.eup %4258  ;;  %4268 = vrcp.f32 %v2123_v5  ;;  %v2141_v8 = vmul.f32 %v4257_v56, %v4840_v31  ;;  %v4153_v56 = vld [vmem:[%s5078_s10 + $0x8] sm:$0xff]   ;;  %v4154_v5 = vld [vmem:[%s5078_s10 + $0x10] sm:$0xff]  }
 0xcc6   :  { %v4261_v6 = vpop.eup %4260  ;;  %4270 = vrcp.f32 %v2121_v3  ;;  %v2147_v19 = vmul.f32 %v4259_v32, %v4837_v53  ;;  %v4152_v3 = vld [vmem:[%s5078_s10] sm:$0xff]   ;;  %v4155_v32 = vld [vmem:[%s5078_s10 + $0x18] sm:$0xff]  }
 0xcc7   :  { %v2143_v34 = vmul.f32 %v4261_v6, %v4843_v41  ;;  %2167 = vxpose.xlu1.c.b16.cont [4/8] %v4872_v36, 128  ;;  %v4263_v51 = vpop.eup %4262  ;;  %3948 = vmatprep.subr.bf16.mxu0 %v4152_v3  ;;  %v4156_v6 = vld [vmem:[%s5078_s10 + $0x20] sm:$0xff]  }
 0xcc8   :  { %v2145_v38 = vmul.f32 %v4263_v51, %v4833_v43 }
 0xcc9   :  { %v4878_v29 = vpack.c.bf16 %v2143_v34, %v2141_v8  ;;  %v4157_v8 = vld [vmem:[%s5078_s10 + $0x28] sm:$0xff]  }
 0xcca   :  { %v4883_v10 = vpack.c.bf16 %v2147_v19, %v2145_v38 }
 0xccb   :  { %v4265_v33 = vpop.eup %4264  ;;  %2168 = vxpose.xlu1.c.b16.cont [5/8] %v4878_v29, 128 }
 0xccc   :  { %v4267_v49 = vpop.eup %4266  ;;  %v2151_v40 = vmul.f32 %v4265_v33, %v4849_v47 }
 0xccd   :  { %v2149_v41 = vmul.f32 %v4267_v49, %v4846_v7 }
 0xccf   :  { %v4269_v31 = vpop.eup %4268  ;;  %2169 = vxpose.xlu1.c.b16.cont [6/8] %v4883_v10, 128  ;;  %v4888_v55 = vpack.c.bf16 %v2151_v40, %v2149_v41 }
 0xcd0   :  { %v4271_v12 = vpop.eup %4270  ;;  %v2155_v53 = vmul.f32 %v4269_v31, %v4855_v15 }
 0xcd1   :  { %v2153_v0 = vmul.f32 %v4271_v12, %v4852_v13 }
 0xcd3   :  { %2170 = vxpose.xlu1.c.b16.cont [7/8] %v4888_v55, 128  ;;  %v4892_v43 = vpack.c.bf16 %v2155_v53, %v2153_v0 }
 0xcd7   :  { %2171 = vxpose.xlu1.c.b16.end [8/8] %v4892_v43, 128 }
 0xd21   :  { %v2172_v47 = vpop.trf.xlu1 }
 0xd22   :  { %3900 = vmatprep.mubr.bf16.mxu0 %v2172_v47 }
 0xd25   :  { %v2173_v54 = vpop.trf.xlu1 }
 0xd26   :  { %3901 = vmatmul.mubr.bf16.vlgmr.msra.gmra.mrb[72].mxu0 %v2173_v54 }
 0xd27   :  { %3949 = vmatpush3.bf16.msra.mxu0 %v4152_v3 }
 0xd28   :  { %3950 = vmatprep.subr.bf16.mxu0 %v4153_v56 }
 0xd29   :  { %v2174_v7 = vpop.trf.xlu1 }
 0xd2a   :  { %3904 = vmatprep.mubr.bf16.mxu0 %v2174_v7 }
 0xd2b   :  { %3951 = vmatpush3.bf16.msra.mxu0 %v4153_v56 }
 0xd2c   :  { %3952 = vmatprep.subr.bf16.mxu0 %v4154_v5 }
 0xd2d   :  { %v2175_v59 = vpop.trf.xlu1 }
 0xd2e   :  { %3905 = vmatmul.mubr.bf16.gmra.mrb[76].mxu0 %v2175_v59 }
 0xd2f   :  { %3953 = vmatpush3.bf16.msra.mxu0 %v4154_v5 }
 0xd30   :  { %3954 = vmatprep.subr.bf16.mxu0 %v4155_v32 }
 0xd31   :  { %v2176_v61 = vpop.trf.xlu1 }
 0xd32   :  { %3908 = vmatprep.mubr.bf16.mxu0 %v2176_v61 }
 0xd33   :  { %3955 = vmatpush3.bf16.msra.mxu0 %v4155_v32 }
 0xd34   :  { %3956 = vmatprep.subr.bf16.mxu0 %v4156_v6 }
 0xd35   :  { %v2177_v15 = vpop.trf.xlu1 }
 0xd36   :  { %3909 = vmatmul.mubr.bf16.gmra.mrb[80].mxu0 %v2177_v15 }
 0xd37   :  { %3957 = vmatpush3.bf16.msra.mxu0 %v4156_v6  ;;  %v4158_v6 = vld [vmem:[%s5078_s10 + $0x30] sm:$0xff]  }
 0xd38   :  { %3958 = vmatprep.subr.bf16.mxu0 %v4157_v8 }
 0xd39   :  { %v2178_v1 = vpop.trf.xlu1 }
 0xd3a   :  { %3912 = vmatprep.mubr.bf16.mxu0 %v2178_v1 }
 0xd3b   :  { %3959 = vmatpush3.bf16.msra.mxu0 %v4157_v8 }
 0xd3c   :  { %3960 = vmatprep.subr.bf16.mxu0 %v4158_v6 }
 0xd3d   :  { %v2179_v13 = vpop.trf.xlu1 }
 0xd3e   :  { %3913 = vmatmul.mubr.bf16.gmra.mrb[84].mxu0 %v2179_v13 }
 0xd3f   :  { %3961 = vmatpush3.bf16.msra.mxu0 %v4158_v6 }
 0xdf9   :  { %v3902_v34 = vpop.f32.mrb[72].mxu0 }
 0xdfa   :  { %v2214_v51 = vpop.f32.mrb[73].mxu0 }
 0xdfb   :  { %v3903_v19 = vpop.f32.mrb[74].mxu0 }
 0xdfc   :  { %v2278_v33 = vpack.c.bf16 %v3903_v19, %v3902_v34  ;;  %v2217_v38 = vpop.f32.mrb[75].mxu0  ;;  %v2286_v34 = vunpack.c.h.bf16 %v4711_v42 }
 0xdfd   :  { %v2277_v49 = vpack.c.bf16 %v2217_v38, %v2214_v51 }
 0xdff   :  { %3916 = vmatprep.subr.bf16.mxu1 %v2277_v49 }
 0xe00   :  { %3917 = vmatpush3.bf16.msra.mxu1 %v2277_v49 }
 0xe01   :  { %v3906_v40 = vpop.f32.mrb[76].mxu0  ;;  %3918 = vmatprep.subr.bf16.mxu1 %v2278_v33 }
 0xe02   :  { %v2230_v31 = vpop.f32.mrb[77].mxu0 }
 0xe03   :  { %v3907_v41 = vpop.f32.mrb[78].mxu0 }
 0xe04   :  { %v2280_v12 = vpack.c.bf16 %v3907_v41, %v3906_v40  ;;  %v2233_v53 = vpop.f32.mrb[79].mxu0  ;;  %3919 = vmatpush3.bf16.msra.mxu1 %v2278_v33  ;;  %v2291_v40 = vunpack.c.l.bf16 %v4718_v60  ;;  %v2289_v41 = vunpack.c.l.bf16 %v4721_v62 }
 0xe05   :  { %v2279_v0 = vpack.c.bf16 %v2233_v53, %v2230_v31 }
 0xe07   :  { %3920 = vmatprep.subr.bf16.mxu1 %v2279_v0 }
 0xe08   :  { %3921 = vmatpush3.bf16.msra.mxu1 %v2279_v0 }
 0xe09   :  { %v3910_v47 = vpop.f32.mrb[80].mxu0  ;;  %3922 = vmatprep.subr.bf16.mxu1 %v2280_v12 }
 0xe0a   :  { %v2246_v54 = vpop.f32.mrb[81].mxu0 }
 0xe0b   :  { %v3911_v7 = vpop.f32.mrb[82].mxu0 }
 0xe0c   :  { %v2282_v59 = vpack.c.bf16 %v3911_v7, %v3910_v47  ;;  %v2249_v61 = vpop.f32.mrb[83].mxu0  ;;  %3923 = vmatpush3.bf16.msra.mxu1 %v2280_v12 }
 0xe0d   :  { %v2281_v15 = vpack.c.bf16 %v2249_v61, %v2246_v54 }
 0xe0f   :  { %3924 = vmatprep.subr.bf16.mxu1 %v2281_v15 }
 0xe10   :  { %3925 = vmatpush3.bf16.msra.mxu1 %v2281_v15 }
 0xe11   :  { %v3914_v1 = vpop.f32.mrb[84].mxu0  ;;  %3926 = vmatprep.subr.bf16.mxu1 %v2282_v59 }
 0xe12   :  { %v2262_v13 = vpop.f32.mrb[85].mxu0 }
 0xe13   :  { %v3915_v3 = vpop.f32.mrb[86].mxu0 }
 0xe14   :  { %v2284_v56 = vpack.c.bf16 %v3915_v3, %v3914_v1  ;;  %v2265_v5 = vpop.f32.mrb[87].mxu0  ;;  %3927 = vmatpush3.bf16.msra.mxu1 %v2282_v59  ;;  %v2295_v1 = vunpack.c.l.bf16 %v4728_v17  ;;  %v2293_v3 = vunpack.c.l.bf16 %v4731_v26 }
 0xe15   :  { %v2283_v32 = vpack.c.bf16 %v2265_v5, %v2262_v13 }
 0xe17   :  { %3928 = vmatprep.subr.bf16.mxu1 %v2283_v32 }
 0xe18   :  { %3929 = vmatpush3.bf16.msra.mxu1 %v2283_v32 }
 0xe19   :  { %3930 = vmatprep.subr.bf16.mxu1 %v2284_v56 }
 0xe1c   :  { %3931 = vmatpush3.bf16.msra.mxu1 %v2284_v56 }
 0xe1f   :  { %3933 = vmatmul.mubr.bf16.vlgmr.msra.gmra.mrb[88].mxu1 %v4862_v50  ;;  %v4159_v50 = vld [vmem:[%s5078_s10 + $0x38] sm:$0xff]  }
 0xe20   :  { %3936 = vmatprep.mubr.bf16.mxu1 %v4868_v14  ;;  %3962 = vmatprep.subr.bf16.mxu0 %v4159_v50  ;;  %v2287_v14 = vunpack.c.l.bf16 %v4709_v48 }
 0xe21   :  { %3963 = vmatpush3.bf16.msra.mxu0 %v4159_v50 }
 0xe27   :  { %3937 = vmatmul.mubr.bf16.gmra.mrb[92].mxu1 %v4872_v36 }
 0xe28   :  { %3940 = vmatprep.mubr.bf16.mxu1 %v4878_v29  ;;  %v2285_v29 = vunpack.c.l.bf16 %v4711_v42  ;;  %v2290_v42 = vunpack.c.h.bf16 %v4721_v62  ;;  %v2294_v62 = vunpack.c.h.bf16 %v4731_v26  ;;  %v2298_v26 = vunpack.c.h.bf16 %v4741_v52 }
 0xe2f   :  { %3941 = vmatmul.mubr.bf16.gmra.mrb[96].mxu1 %v4883_v10 }
 0xe30   :  { %3944 = vmatprep.mubr.bf16.mxu1 %v4888_v55 }
 0xe37   :  { %3945 = vmatmul.mubr.bf16.gmra.mrb[100].mxu1 %v4892_v43 }
 0xe38   :  { %3996 = vmatprep.mubr.bf16.mxu1 %v4631_v58  ;;  %v2288_v58 = vunpack.c.h.bf16 %v4709_v48  ;;  %v2292_v48 = vunpack.c.h.bf16 %v4718_v60  ;;  %v2296_v60 = vunpack.c.h.bf16 %v4728_v17  ;;  %v2300_v17 = vunpack.c.h.bf16 %v4738_v45 }
 0xef2   :  { %v3934_v36 = vpop.f32.mrb[88].mxu1 }
 0xef3   :  { %v2344_v10 = vadd.f32 %v3934_v36, %v2287_v14  ;;  %v2335_v55 = vpop.f32.mrb[89].mxu1 }
 0xef4   :  { %v2336_v43 = vadd.f32 %v2335_v55, %v2285_v29  ;;  %v3935_v8 = vpop.f32.mrb[90].mxu1  ;;  %v2299_v55 = vunpack.c.l.bf16 %v4738_v45 }
 0xef5   :  { %v2347_v51 = vadd.f32 %v3935_v8, %v2288_v58  ;;  %v2338_v19 = vpop.f32.mrb[91].mxu1 }
 0xef6   :  { %v2339_v33 = vadd.f32 %v2338_v19, %v2286_v34 }
 0xef7   :  { %v2399_v38 = vpack.c.bf16 %v2347_v51, %v2344_v10 }
 0xef8   :  { %v2398_v49 = vpack.c.bf16 %v2339_v33, %v2336_v43  ;;  %v2297_v43 = vunpack.c.l.bf16 %v4741_v52 }
 0xefa   :  { %v3938_v31 = vpop.f32.mrb[92].mxu1  ;;  %3964 = vmatprep.mubr.bf16.mxu0 %v2398_v49 }
 0xefb   :  { %v2360_v12 = vadd.f32 %v3938_v31, %v2291_v40  ;;  %v2351_v53 = vpop.f32.mrb[93].mxu1  ;;  %3965 = vmatmul.mubr.bf16.vlgmr.msra.gmra.mrb[88].mxu0 %v2399_v38 }
 0xefc   :  { %v2352_v0 = vadd.f32 %v2351_v53, %v2289_v41  ;;  %v3939_v47 = vpop.f32.mrb[94].mxu1 }
 0xefd   :  { %v2363_v54 = vadd.f32 %v3939_v47, %v2292_v48  ;;  %v2354_v7 = vpop.f32.mrb[95].mxu1 }
 0xefe   :  { %v2355_v59 = vadd.f32 %v2354_v7, %v2290_v42 }
 0xeff   :  { %v2401_v61 = vpack.c.bf16 %v2363_v54, %v2360_v12 }
 0xf00   :  { %v2400_v15 = vpack.c.bf16 %v2355_v59, %v2352_v0 }
 0xf02   :  { %v3942_v13 = vpop.f32.mrb[96].mxu1  ;;  %3968 = vmatprep.mubr.bf16.mxu0 %v2400_v15 }
 0xf03   :  { %v2376_v56 = vadd.f32 %v3942_v13, %v2295_v1  ;;  %v2367_v5 = vpop.f32.mrb[97].mxu1  ;;  %3969 = vmatmul.mubr.bf16.gmra.mrb[92].mxu0 %v2401_v61 }
 0xf04   :  { %v2368_v32 = vadd.f32 %v2367_v5, %v2293_v3  ;;  %v3943_v6 = vpop.f32.mrb[98].mxu1 }
 0xf05   :  { %v2379_v50 = vadd.f32 %v3943_v6, %v2296_v60  ;;  %v2370_v14 = vpop.f32.mrb[99].mxu1 }
 0xf06   :  { %v2371_v36 = vadd.f32 %v2370_v14, %v2294_v62 }
 0xf07   :  { %v2403_v29 = vpack.c.bf16 %v2379_v50, %v2376_v56  ;;  %v4160_v50 = vld [vmem:[%s5079_s9] sm:$0xff]  }
 0xf08   :  { %v2402_v10 = vpack.c.bf16 %v2371_v36, %v2368_v32 }
 0xf0a   :  { %v3946_v58 = vpop.f32.mrb[100].mxu1  ;;  %3972 = vmatprep.mubr.bf16.mxu0 %v2402_v10 }
 0xf0b   :  { %v2392_v8 = vadd.f32 %v3946_v58, %v2299_v55  ;;  %v2383_v34 = vpop.f32.mrb[101].mxu1  ;;  %3973 = vmatmul.mubr.bf16.gmra.mrb[96].mxu0 %v2403_v29 }
 0xf0c   :  { %v2384_v51 = vadd.f32 %v2383_v34, %v2297_v43  ;;  %v3947_v19 = vpop.f32.mrb[102].mxu1 }
 0xf0d   :  { %v2395_v33 = vadd.f32 %v3947_v19, %v2300_v17  ;;  %v2386_v38 = vpop.f32.mrb[103].mxu1 }
 0xf0e   :  { %v2387_v49 = vadd.f32 %v2386_v38, %v2298_v26 }
 0xf0f   :  { %v2405_v40 = vpack.c.bf16 %v2395_v33, %v2392_v8 }
 0xf10   :  { %v2404_v31 = vpack.c.bf16 %v2387_v49, %v2384_v51 }
 0xf12   :  { %3976 = vmatprep.mubr.bf16.mxu0 %v2404_v31 }
 0xf13   :  { %3977 = vmatmul.mubr.bf16.gmra.mrb[100].mxu0 %v2405_v40 }
 0xf14   :  { %4028 = vmatprep.mubr.bf16.mxu0 %v4563_v4 }
 0xfce   :  { %v3966_v41 = vpop.f32.mrb[88].mxu0 }
 0xfcf   :  { %v2504_v12 = vpop.f32.mrb[89].mxu0 }
 0xfd0   :  { %v3967_v53 = vpop.f32.mrb[90].mxu0 }
 0xfd1   :  { %v2568_v48 = vpack.c.bf16 %v3967_v53, %v3966_v41  ;;  %v2507_v0 = vpop.f32.mrb[91].mxu0 }
 0xfd2   :  { %v2567_v47 = vpack.c.bf16 %v2507_v0, %v2504_v12 }
 0xfd4   :  { %3980 = vmatprep.subr.bf16.mxu1 %v2567_v47 }
 0xfd5   :  { %3981 = vmatpush3.bf16.msra.mxu1 %v2567_v47 }
 0xfd6   :  { %v3970_v45 = vpop.f32.mrb[92].mxu0  ;;  %3982 = vmatprep.subr.bf16.mxu1 %v2568_v48 }
 0xfd7   :  { %v2520_v52 = vpop.f32.mrb[93].mxu0 }
 0xfd8   :  { %v3971_v42 = vpop.f32.mrb[94].mxu0 }
 0xfd9   :  { %v2570_v54 = vpack.c.bf16 %v3971_v42, %v3970_v45  ;;  %v2523_v7 = vpop.f32.mrb[95].mxu0  ;;  %3983 = vmatpush3.bf16.msra.mxu1 %v2568_v48 }
 0xfda   :  { %v2569_v59 = vpack.c.bf16 %v2523_v7, %v2520_v52 }
 0xfdc   :  { %3984 = vmatprep.subr.bf16.mxu1 %v2569_v59 }
 0xfdd   :  { %3985 = vmatpush3.bf16.msra.mxu1 %v2569_v59 }
 0xfde   :  { %v3974_v61 = vpop.f32.mrb[96].mxu0  ;;  %3986 = vmatprep.subr.bf16.mxu1 %v2570_v54 }
 0xfdf   :  { %v2536_v4 = vpop.f32.mrb[97].mxu0 }
 0xfe0   :  { %v3975_v15 = vpop.f32.mrb[98].mxu0 }
 0xfe1   :  { %v2572_v1 = vpack.c.bf16 %v3975_v15, %v3974_v61  ;;  %v2539_v13 = vpop.f32.mrb[99].mxu0  ;;  %3987 = vmatpush3.bf16.msra.mxu1 %v2570_v54 }
 0xfe2   :  { %v2571_v3 = vpack.c.bf16 %v2539_v13, %v2536_v4 }
 0xfe4   :  { %3988 = vmatprep.subr.bf16.mxu1 %v2571_v3 }
 0xfe5   :  { %3989 = vmatpush3.bf16.msra.mxu1 %v2571_v3 }
 0xfe6   :  { %v3978_v56 = vpop.f32.mrb[100].mxu0  ;;  %3990 = vmatprep.subr.bf16.mxu1 %v2572_v1 }
 0xfe7   :  { %v2552_v5 = vpop.f32.mrb[101].mxu0 }
 0xfe8   :  { %v3979_v60 = vpop.f32.mrb[102].mxu0 }
 0xfe9   :  { %v2574_v32 = vpack.c.bf16 %v3979_v60, %v3978_v56  ;;  %v2555_v6 = vpop.f32.mrb[103].mxu0  ;;  %3991 = vmatpush3.bf16.msra.mxu1 %v2572_v1 }
 0xfea   :  { %v2573_v62 = vpack.c.bf16 %v2555_v6, %v2552_v5 }
 0xfec   :  { %3992 = vmatprep.subr.bf16.mxu1 %v2573_v62 }
 0xfed   :  { %3993 = vmatpush3.bf16.msra.mxu1 %v2573_v62 }
 0xfee   :  { %3994 = vmatprep.subr.bf16.mxu1 %v2574_v32 }
 0xff1   :  { %3995 = vmatpush3.bf16.msra.mxu1 %v2574_v32 }
 0xff2   :  { %4036 = vmatprep.subr.bf16.mxu1 %v4160_v50 }
 0xff4   :  { %3997 = vmatmul.mubr.bf16.vlgmr.msra.gmra.mrb[104].mxu1 %v4629_v57  ;;  %v4161_v57 = vld [vmem:[%s5079_s9 + $0x8] sm:$0xff]  }
 0xff5   :  { %4000 = vmatprep.mubr.bf16.mxu1 %v4642_v2  ;;  %4037 = vmatpush3.bf16.msra.mxu1 %v4160_v50  ;;  %v4163_v2 = vld [vmem:[%s5079_s9 + $0x18] sm:$0xff]  }
 0xff6   :  { %4038 = vmatprep.subr.bf16.mxu1 %v4161_v57 }
 0xff9   :  { %4039 = vmatpush3.bf16.msra.mxu1 %v4161_v57 }
 0xffc   :  { %4001 = vmatmul.mubr.bf16.gmra.mrb[108].mxu1 %v4637_v63  ;;  %v4162_v63 = vld [vmem:[%s5079_s9 + $0x10] sm:$0xff]  }
 0xffd   :  { %4004 = vmatprep.mubr.bf16.mxu1 %v4652_v11  ;;  %4040 = vmatprep.subr.bf16.mxu1 %v4162_v63  ;;  %v4165_v11 = vld [vmem:[%s5079_s9 + $0x28] sm:$0xff]  }
 0xffe   :  { %4041 = vmatpush3.bf16.msra.mxu1 %v4162_v63 }
 0xfff   :  { %4042 = vmatprep.subr.bf16.mxu1 %v4163_v2 }
0x1002   :  { %4043 = vmatpush3.bf16.msra.mxu1 %v4163_v2 }
0x1004   :  { %4005 = vmatmul.mubr.bf16.gmra.mrb[112].mxu1 %v4650_v9  ;;  %v4164_v9 = vld [vmem:[%s5079_s9 + $0x20] sm:$0xff]  }
0x1005   :  { %4008 = vmatprep.mubr.bf16.mxu1 %v4662_v28  ;;  %4044 = vmatprep.subr.bf16.mxu1 %v4164_v9 }
0x1006   :  { %4045 = vmatpush3.bf16.msra.mxu1 %v4164_v9 }
0x1007   :  { %4046 = vmatprep.subr.bf16.mxu1 %v4165_v11 }
0x100a   :  { %4047 = vmatpush3.bf16.msra.mxu1 %v4165_v11 }
0x100c   :  { %4009 = vmatmul.mubr.bf16.gmra.mrb[116].mxu1 %v4660_v24 }
0x10c7   :  { %v3998_v24 = vpop.f32.mrb[104].mxu1 }
0x10c8   :  { %v2690_v28 = vmul.f32 0.2, %v3998_v24  ;;  %v2609_v14 = vpop.f32.mrb[105].mxu1  ;;  %vm2674_vm7 = vcmp.gt.f32.partialorder %v3998_v24, 0.0 }
0x10c9   :  { %v2688_v36 = vmul.f32 0.2, %v2609_v14  ;;  %v3999_v29 = vpop.f32.mrb[106].mxu1  ;;  %vm2672_vm8 = vcmp.gt.f32.partialorder %v2609_v14, 0.0 }
0x10ca   :  { %vm2675_vm9 = vcmp.gt.f32.partialorder %v3999_v29, 0.0  ;;  %v2691_v10 = vmul.f32 0.2, %v3999_v29  ;;  %v2612_v55 = vpop.f32.mrb[107].mxu1  ;;  %v2706_v43 = vsel %vm2674_vm7, %v3998_v24, %v2690_v28 }
0x10cb   :  { %vm2673_vm10 = vcmp.gt.f32.partialorder %v2612_v55, 0.0  ;;  %v2689_v58 = vmul.f32 0.2, %v2612_v55  ;;  %v2704_v34 = vsel %vm2672_vm8, %v2609_v14, %v2688_v36 }
0x10cc   :  { %v2707_v8 = vsel %vm2675_vm9, %v3999_v29, %v2691_v10 }
0x10cd   :  { %v2705_v17 = vsel %vm2673_vm10, %v2612_v55, %v2689_v58  ;;  %v2721_v51 = vpack.c.bf16 %v2707_v8, %v2706_v43  ;;  %v4272_v55 = vld [vmem:[%s5072_s0] sm:$0xff]   ;;  %v4166_v58 = vld [vmem:[%s5079_s9 + $0x30] sm:$0xff]   ;;  %v2728_v43 = vunpack.c.l.bf16 %v4520_v25 }
0x10ce   :  { %v2720_v19 = vpack.c.bf16 %v2705_v17, %v2704_v34  ;;  %4048 = vmatprep.subr.bf16.mxu1 %v4166_v58  ;;  %v2731_v17 = vunpack.c.h.bf16 %v4518_v18 }
0x10cf   :  { %v4002_v26 = vpop.f32.mrb[108].mxu1  ;;  %4049 = vmatpush3.bf16.msra.mxu1 %v4166_v58  ;;  %v4275_v58 = vld [vmem:[%s5072_s0 + $0x18] sm:$0xff]  }
0x10d0   :  { %v2694_v33 = vmul.f32 0.2, %v4002_v26  ;;  %v2625_v38 = vpop.f32.mrb[109].mxu1  ;;  %4012 = vmatprep.subr.bf16.mxu0 %v2720_v19  ;;  %vm2678_vm11 = vcmp.gt.f32.partialorder %v4002_v26, 0.0 }
0x10d1   :  { %v2692_v49 = vmul.f32 0.2, %v2625_v38  ;;  %v4003_v40 = vpop.f32.mrb[110].mxu1  ;;  %4013 = vmatpush3.bf16.msra.mxu0 %v2720_v19  ;;  %vm2676_vm12 = vcmp.gt.f32.partialorder %v2625_v38, 0.0 }
0x10d2   :  { %vm2679_vm13 = vcmp.gt.f32.partialorder %v4003_v40, 0.0  ;;  %v2695_v31 = vmul.f32 0.2, %v4003_v40  ;;  %v2628_v41 = vpop.f32.mrb[111].mxu1  ;;  %4014 = vmatprep.subr.bf16.mxu0 %v2721_v51  ;;  %v2710_v53 = vsel %vm2678_vm11, %v4002_v26, %v2694_v33  ;;  %v2729_v26 = vunpack.c.h.bf16 %v4520_v25 }
0x10d3   :  { %vm2677_vm14 = vcmp.gt.f32.partialorder %v2628_v41, 0.0  ;;  %v2693_v12 = vmul.f32 0.2, %v2628_v41  ;;  %v2708_v0 = vsel %vm2676_vm12, %v2625_v38, %v2692_v49  ;;  %v2733_v25 = vunpack.c.h.bf16 %v4534_v46 }
0x10d4   :  { %v2711_v48 = vsel %vm2679_vm13, %v4003_v40, %v2695_v31 }
0x10d5   :  { %v2709_v47 = vsel %vm2677_vm14, %v2628_v41, %v2693_v12  ;;  %4015 = vmatpush3.bf16.msra.mxu0 %v2721_v51  ;;  %v2723_v45 = vpack.c.bf16 %v2711_v48, %v2710_v53  ;;  %v2734_v41 = vunpack.c.l.bf16 %v4531_v44  ;;  %v2732_v53 = vunpack.c.l.bf16 %v4534_v46 }
0x10d6   :  { %v2722_v52 = vpack.c.bf16 %v2709_v47, %v2708_v0 }
0x10d7   :  { %v4006_v42 = vpop.f32.mrb[112].mxu1 }
0x10d8   :  { %v2698_v54 = vmul.f32 0.2, %v4006_v42  ;;  %v2641_v7 = vpop.f32.mrb[113].mxu1  ;;  %4016 = vmatprep.subr.bf16.mxu0 %v2722_v52  ;;  %vm2682_vm15 = vcmp.gt.f32.partialorder %v4006_v42, 0.0 }
0x10d9   :  { %v2696_v59 = vmul.f32 0.2, %v2641_v7  ;;  %v4007_v61 = vpop.f32.mrb[114].mxu1  ;;  %4017 = vmatpush3.bf16.msra.mxu0 %v2722_v52  ;;  %vm2680_vm0 = vcmp.gt.f32.partialorder %v2641_v7, 0.0 }
0x10da   :  { %vm2683_vm2 = vcmp.gt.f32.partialorder %v4007_v61, 0.0  ;;  %v2699_v4 = vmul.f32 0.2, %v4007_v61  ;;  %v2644_v15 = vpop.f32.mrb[115].mxu1  ;;  %4018 = vmatprep.subr.bf16.mxu0 %v2723_v45  ;;  %v2714_v13 = vsel %vm2682_vm15, %v4006_v42, %v2698_v54 }
0x10db   :  { %vm2681_vm3 = vcmp.gt.f32.partialorder %v2644_v15, 0.0  ;;  %v2697_v1 = vmul.f32 0.2, %v2644_v15  ;;  %v2712_v56 = vsel %vm2680_vm0, %v2641_v7, %v2696_v59 }
0x10dc   :  { %v2715_v3 = vsel %vm2683_vm2, %v4007_v61, %v2699_v4 }
0x10dd   :  { %v2713_v5 = vsel %vm2681_vm3, %v2644_v15, %v2697_v1  ;;  %4019 = vmatpush3.bf16.msra.mxu0 %v2723_v45  ;;  %v2725_v60 = vpack.c.bf16 %v2715_v3, %v2714_v13 }
0x10de   :  { %v2724_v32 = vpack.c.bf16 %v2713_v5, %v2712_v56 }
0x10df   :  { %v4010_v6 = vpop.f32.mrb[116].mxu1 }
0x10e0   :  { %v2702_v62 = vmul.f32 0.2, %v4010_v6  ;;  %v2657_v50 = vpop.f32.mrb[117].mxu1  ;;  %4020 = vmatprep.subr.bf16.mxu0 %v2724_v32  ;;  %vm2686_vm4 = vcmp.gt.f32.partialorder %v4010_v6, 0.0 }
0x10e1   :  { %v2700_v57 = vmul.f32 0.2, %v2657_v50  ;;  %v4011_v63 = vpop.f32.mrb[118].mxu1  ;;  %4021 = vmatpush3.bf16.msra.mxu0 %v2724_v32  ;;  %vm2684_vm5 = vcmp.gt.f32.partialorder %v2657_v50, 0.0 }
0x10e2   :  { %vm2687_vm6 = vcmp.gt.f32.partialorder %v4011_v63, 0.0  ;;  %v2703_v2 = vmul.f32 0.2, %v4011_v63  ;;  %v2660_v9 = vpop.f32.mrb[119].mxu1  ;;  %4022 = vmatprep.subr.bf16.mxu0 %v2725_v60  ;;  %v2718_v24 = vsel %vm2686_vm4, %v4010_v6, %v2702_v62 }
0x10e3   :  { %vm2685_vm7 = vcmp.gt.f32.partialorder %v2660_v9, 0.0  ;;  %v2701_v11 = vmul.f32 0.2, %v2660_v9  ;;  %v2716_v14 = vsel %vm2684_vm5, %v2657_v50, %v2700_v57 }
0x10e4   :  { %v2719_v28 = vsel %vm2687_vm6, %v4011_v63, %v2703_v2  ;;  %v5086_v2 = vld [vmem:[#allocation2_spill] sm:$0xff] }
0x10e5   :  { %v2717_v36 = vsel %vm2685_vm7, %v2660_v9, %v2701_v11  ;;  %4023 = vmatpush3.bf16.msra.mxu0 %v2725_v60  ;;  %v2727_v29 = vpack.c.bf16 %v2719_v28, %v2718_v24  ;;  %v4168_v28 = vld [vmem:[%s5080_s11] sm:$0xff]  }
0x10e6   :  { %v2726_v10 = vpack.c.bf16 %v2717_v36, %v2716_v14  ;;  %v4169_v14 = vld [vmem:[%s5080_s11 + $0x8] sm:$0xff]  }
0x10e7   :  { %v4273_v36 = vld [vmem:[%s5072_s0 + $0x8] sm:$0xff]  }
0x10e8   :  { %4024 = vmatprep.subr.bf16.mxu0 %v2726_v10 }
0x10e9   :  { %4025 = vmatpush3.bf16.msra.mxu0 %v2726_v10  ;;  %v4170_v10 = vld [vmem:[%s5080_s11 + $0x10] sm:$0xff]  }
0x10ea   :  { %4026 = vmatprep.subr.bf16.mxu0 %v2727_v29 }
0x10ed   :  { %4027 = vmatpush3.bf16.msra.mxu0 %v2727_v29  ;;  %v4274_v29 = vld [vmem:[%s5072_s0 + $0x10] sm:$0xff]  }
0x10f0   :  { %4029 = vmatmul.mubr.bf16.vlgmr.msra.gmra.mrb[104].mxu0 %v4570_v16  ;;  %v4167_v16 = vld [vmem:[%s5079_s9 + $0x38] sm:$0xff]  }
0x10f1   :  { %4032 = vmatprep.mubr.bf16.mxu0 %v4575_v30  ;;  %4050 = vmatprep.subr.bf16.mxu1 %v4167_v16  ;;  %v2730_v30 = vunpack.c.l.bf16 %v4518_v18  ;;  %v2735_v18 = vunpack.c.h.bf16 %v4531_v44 }
0x10f2   :  { %4051 = vmatpush3.bf16.msra.mxu1 %v4167_v16  ;;  %v4172_v16 = vld [vmem:[%s5080_s11 + $0x20] sm:$0xff]  }
0x10f8   :  { %4033 = vmatmul.mubr.bf16.gmra.mrb[108].mxu0 %v4580_v35 }
0x10f9   :  { %4068 = vmatprep.mubr.msk.bf16.mxu0 %vm247_vm1, %v4272_v55  ;;  %v4171_v55 = vld [vmem:[%s5080_s11 + $0x18] sm:$0xff]  }
0x11c3   :  { %v4030_v35 = vpop.f32.mrb[104].mxu0 }
0x11c4   :  { %v2779_v8 = vadd.f32 %v4030_v35, %v2730_v30  ;;  %v2770_v34 = vpop.f32.mrb[105].mxu0  ;;  %v4173_v30 = vld [vmem:[%s5080_s11 + $0x28] sm:$0xff]   ;;  %v4174_v35 = vld [vmem:[%s5080_s11 + $0x30] sm:$0xff]  }
0x11c5   :  { %v2771_v51 = vadd.f32 %v2770_v34, %v2728_v43  ;;  %v4031_v19 = vpop.f32.mrb[106].mxu0  ;;  %v4175_v43 = vld [vmem:[%s5080_s11 + $0x38] sm:$0xff]  }
0x11c6   :  { %v2782_v33 = vadd.f32 %v4031_v19, %v2731_v17  ;;  %v2773_v38 = vpop.f32.mrb[107].mxu0 }
0x11c7   :  { %v2774_v49 = vadd.f32 %v2773_v38, %v2729_v26 }
0x11c8   :  { %v2802_v40 = vpack.c.bf16 %v2782_v33, %v2779_v8 }
0x11c9   :  { %v2801_v31 = vpack.c.bf16 %v2774_v49, %v2771_v51 }
0x11cb   :  { %v4034_v12 = vpop.f32.mrb[108].mxu0  ;;  %4052 = vmatprep.mubr.bf16.mxu1 %v2801_v31 }
0x11cc   :  { %v2795_v48 = vadd.f32 %v4034_v12, %v2734_v41  ;;  %v2786_v0 = vpop.f32.mrb[109].mxu0  ;;  %4053 = vmatmul.mubr.bf16.vlgmr.msra.gmra.mrb[120].mxu1 %v2802_v40 }
0x11cd   :  { %v2787_v47 = vadd.f32 %v2786_v0, %v2732_v53  ;;  %v4035_v45 = vpop.f32.mrb[110].mxu0 }
0x11ce   :  { %v2798_v52 = vadd.f32 %v4035_v45, %v2735_v18  ;;  %v2789_v42 = vpop.f32.mrb[111].mxu0 }
0x11cf   :  { %v2790_v54 = vadd.f32 %v2789_v42, %v2733_v25 }
0x11d0   :  { %v2804_v7 = vpack.c.bf16 %v2798_v52, %v2795_v48 }
0x11d1   :  { %v2803_v59 = vpack.c.bf16 %v2790_v54, %v2787_v47 }
0x11d3   :  { %4056 = vmatprep.mubr.bf16.mxu1 %v2803_v59 }
0x11d4   :  { %4057 = vmatmul.mubr.bf16.gmra.mrb[124].mxu1 %v2804_v7 }
0x129f   :  { %v4054_v61 = vpop.f32.mrb[120].mxu1 }
0x12a0   :  { %v2903_v4 = vpop.f32.mrb[121].mxu1  ;;  %v2936_v1 = vmul.f32 %v4054_v61, %v4414_v21 }
0x12a1   :  { %v4055_v15 = vpop.f32.mrb[122].mxu1  ;;  %v2934_v44 = vmul.f32 %v2903_v4, %v4412_v20 }
0x12a2   :  { %v2937_v13 = vmul.f32 %v4055_v15, %v4418_v23  ;;  %v2906_v3 = vpop.f32.mrb[123].mxu1 }
0x12a3   :  { %v2935_v56 = vmul.f32 %v2906_v3, %v4416_v22 }
0x12a4   :  { %v2943_v46 = vpack.c.bf16 %v2937_v13, %v2936_v1 }
0x12a5   :  { %v2942_v5 = vpack.c.bf16 %v2935_v56, %v2934_v44 }
0x12a7   :  { %v4058_v60 = vpop.f32.mrb[124].mxu1  ;;  %4060 = vmatprep.subr.bf16.mxu0 %v2942_v5 }
0x12a8   :  { %v2919_v32 = vpop.f32.mrb[125].mxu1  ;;  %4061 = vmatpush3.bf16.msra.mxu0 %v2942_v5  ;;  %v2940_v62 = vmul.f32 %v4058_v60, %v4428_v37 }
0x12a9   :  { %v4059_v6 = vpop.f32.mrb[126].mxu1  ;;  %4062 = vmatprep.subr.bf16.mxu0 %v2943_v46  ;;  %v2938_v63 = vmul.f32 %v2919_v32, %v4420_v27 }
0x12aa   :  { %v2941_v50 = vmul.f32 %v4059_v6, %v4430_v39  ;;  %v2922_v57 = vpop.f32.mrb[127].mxu1 }
0x12ab   :  { %v2939_v9 = vmul.f32 %v2922_v57, %v5086_v2 }
0x12ac   :  { %v2945_v11 = vpack.c.bf16 %v2941_v50, %v2940_v62  ;;  %4063 = vmatpush3.bf16.msra.mxu0 %v2943_v46 }
0x12ad   :  { %v2944_v24 = vpack.c.bf16 %v2939_v9, %v2938_v63 }
0x12af   :  { %4064 = vmatprep.subr.bf16.mxu0 %v2944_v24 }
0x12b0   :  { %4065 = vmatpush3.bf16.msra.mxu0 %v2944_v24 }
0x12b1   :  { %4066 = vmatprep.subr.bf16.mxu0 %v2945_v11 }
0x12b4   :  { %4067 = vmatpush3.bf16.msra.mxu0 %v2945_v11 }
0x12b5   :  { %4076 = vmatprep.subr.bf16.mxu0 %v4168_v28 }
0x12b7   :  { %4069 = vmatmul.mubr.msk.bf16.vlgmr.msra.gmra.mrb[112].mxu0 %vm247_vm1, %v4273_v36 }
0x12b8   :  { %4072 = vmatprep.mubr.msk.bf16.mxu0 %vm247_vm1, %v4274_v29  ;;  %4077 = vmatpush3.bf16.msra.mxu0 %v4168_v28 }
0x12b9   :  { %4078 = vmatprep.subr.bf16.mxu0 %v4169_v14 }
0x12bc   :  { %4079 = vmatpush3.bf16.msra.mxu0 %v4169_v14 }
0x12bd   :  { %4080 = vmatprep.subr.bf16.mxu0 %v4170_v10 }
0x12bf   :  { %4073 = vmatmul.mubr.msk.bf16.gmra.mrb[116].mxu0 %vm247_vm1, %v4275_v58 }
0x12c0   :  { %4081 = vmatpush3.bf16.msra.mxu0 %v4170_v10 }
0x12c1   :  { %4082 = vmatprep.subr.bf16.mxu0 %v4171_v55 }
0x12c4   :  { %4083 = vmatpush3.bf16.msra.mxu0 %v4171_v55 }
0x12c5   :  { %4084 = vmatprep.subr.bf16.mxu0 %v4172_v16 }
0x12c8   :  { %4085 = vmatpush3.bf16.msra.mxu0 %v4172_v16 }
0x12c9   :  { %4086 = vmatprep.subr.bf16.mxu0 %v4173_v30 }
0x12cc   :  { %4087 = vmatpush3.bf16.msra.mxu0 %v4173_v30 }
0x12cd   :  { %4088 = vmatprep.subr.bf16.mxu0 %v4174_v35 }
0x12d0   :  { %4089 = vmatpush3.bf16.msra.mxu0 %v4174_v35 }
0x12d1   :  { %4090 = vmatprep.subr.bf16.mxu0 %v4175_v43 }
0x12d4   :  { %4091 = vmatpush3.bf16.msra.mxu0 %v4175_v43 }
0x138a   :  { %v4070_v8 = vpop.f32.mrb[112].mxu0 }
0x138b   :  { %v3013_v34 = vmul.f32 %v4070_v8, %v4414_v21  ;;  %v2980_v17 = vpop.f32.mrb[113].mxu0 }
0x138c   :  { %v3011_v51 = vmul.f32 %v2980_v17, %v4412_v20  ;;  %v4071_v19 = vpop.f32.mrb[114].mxu0 }
0x138d   :  { %v3029_v26 = vmul.f32 0.2, %v3013_v34  ;;  %v3014_v33 = vmul.f32 %v4071_v19, %v4418_v23  ;;  %v2983_v38 = vpop.f32.mrb[115].mxu0  ;;  %vm3021_vm1 = vcmp.gt.f32.partialorder %v3013_v34, 0.0 }
0x138e   :  { %v3027_v49 = vmul.f32 0.2, %v3011_v51  ;;  %v3012_v40 = vmul.f32 %v2983_v38, %v4416_v22  ;;  %vm3019_vm8 = vcmp.gt.f32.partialorder %v3011_v51, 0.0 }
0x138f   :  { %vm3022_vm9 = vcmp.gt.f32.partialorder %v3014_v33, 0.0  ;;  %v3030_v31 = vmul.f32 0.2, %v3014_v33  ;;  %v3037_v12 = vsel %vm3021_vm1, %v3013_v34, %v3029_v26 }
0x1390   :  { %vm3020_vm10 = vcmp.gt.f32.partialorder %v3012_v40, 0.0  ;;  %v3028_v41 = vmul.f32 0.2, %v3012_v40  ;;  %v3035_v0 = vsel %vm3019_vm8, %v3011_v51, %v3027_v49 }
0x1391   :  { %v3038_v53 = vsel %vm3022_vm9, %v3014_v33, %v3030_v31 }
0x1392   :  { %v3044_v21 = vpack.c.bf16 %v3038_v53, %v3037_v12  ;;  %v4074_v48 = vpop.f32.mrb[116].mxu0  ;;  %v3036_v20 = vsel %vm3020_vm10, %v3012_v40, %v3028_v41 }
0x1393   :  { %v3017_v18 = vmul.f32 %v4074_v48, %v4428_v37  ;;  %v2996_v47 = vpop.f32.mrb[117].mxu0  ;;  %v3043_v23 = vpack.c.bf16 %v3036_v20, %v3035_v0 }
0x1394   :  { %v3015_v45 = vmul.f32 %v2996_v47, %v4420_v27  ;;  %v4075_v25 = vpop.f32.mrb[118].mxu0 }
0x1395   :  { %v3033_v52 = vmul.f32 0.2, %v3017_v18  ;;  %v3018_v22 = vmul.f32 %v4075_v25, %v4430_v39  ;;  %v2999_v42 = vpop.f32.mrb[119].mxu0  ;;  %4092 = vmatprep.mubr.bf16.mxu0 %v3043_v23  ;;  %vm3025_vm11 = vcmp.gt.f32.partialorder %v3017_v18, 0.0  ;;  %v3296_v39 = vld [vmem:[%s5081_s12] ss:$0 sm:$0xff] }
0x1396   :  { %v3031_v54 = vmul.f32 0.2, %v3015_v45  ;;  %v3016_v7 = vmul.f32 %v2999_v42, %v5086_v2  ;;  %4093 = vmatmul.mubr.bf16.vlgmr.msra.gmra.mrb[120].mxu0 %v3044_v21  ;;  %vm3023_vm12 = vcmp.gt.f32.partialorder %v3015_v45, 0.0 }
0x1397   :  { %vm3026_vm13 = vcmp.gt.f32.partialorder %v3018_v22, 0.0  ;;  %v3034_v59 = vmul.f32 0.2, %v3018_v22  ;;  %v3041_v61 = vsel %vm3025_vm11, %v3017_v18, %v3033_v52 }
0x1398   :  { %vm3024_vm14 = vcmp.gt.f32.partialorder %v3016_v7, 0.0  ;;  %v3032_v37 = vmul.f32 0.2, %v3016_v7  ;;  %v3039_v15 = vsel %vm3023_vm12, %v3015_v45, %v3031_v54 }
0x1399   :  { %v3042_v4 = vsel %vm3026_vm13, %v3018_v22, %v3034_v59 }
0x139a   :  { %v3040_v27 = vsel %vm3024_vm14, %v3016_v7, %v3032_v37  ;;  %v3046_v1 = vpack.c.bf16 %v3042_v4, %v3041_v61 }
0x139b   :  { %v3045_v13 = vpack.c.bf16 %v3040_v27, %v3039_v15 }
0x139d   :  { %4096 = vmatprep.mubr.bf16.mxu0 %v3045_v13 }
0x139e   :  { %4097 = vmatmul.mubr.bf16.gmra.mrb[124].mxu0 %v3046_v1 }
0x1469   :  { %v4094_v3 = vpop.f32.mrb[120].mxu0 }
0x146a   :  { %v3161_v44 = vadd.f32 %v4094_v3, %v3296_v39  ;;  %v3152_v56 = vpop.f32.mrb[121].mxu0 }
0x146b   :  { %v3153_v46 = vadd.f32 %v3296_v39, %v3152_v56  ;;  %v4095_v5 = vpop.f32.mrb[122].mxu0 }
0x146c   :  { %3185 = vst [vmem:[%s5082_s13 + $0x10] sm:$0xff] %v3161_v44  ;;  %v3164_v60 = vadd.f32 %v4095_v5, %v3296_v39  ;;  %v3155_v32 = vpop.f32.mrb[123].mxu0 }
0x146d   :  { %3183 = vst [vmem:[%s5082_s13] sm:$0xff] %v3153_v46  ;;  %v3156_v6 = vadd.f32 %v3296_v39, %v3155_v32 }
0x146e   :  { %3186 = vst [vmem:[%s5082_s13 + $0x18] sm:$0xff] %v3164_v60 }
0x146f   :  { %3184 = vst [vmem:[%s5082_s13 + $0x8] sm:$0xff] %v3156_v6 }
0x1471   :  { %v4098_v62 = vpop.f32.mrb[124].mxu0 }
0x1472   :  { %v3177_v50 = vadd.f32 %v4098_v62, %v3296_v39  ;;  %v3168_v57 = vpop.f32.mrb[125].mxu0 }
0x1473   :  { %v3169_v63 = vadd.f32 %v3296_v39, %v3168_v57  ;;  %v4099_v2 = vpop.f32.mrb[126].mxu0 }
0x1474   :  { %3189 = vst [vmem:[%s5082_s13 + $0x30] sm:$0xff] %v3177_v50  ;;  %v3180_v9 = vadd.f32 %v4099_v2, %v3296_v39  ;;  %v3171_v11 = vpop.f32.mrb[127].mxu0 }
0x1475   :  { %3187 = vst [vmem:[%s5082_s13 + $0x20] sm:$0xff] %v3169_v63  ;;  %v3172_v24 = vadd.f32 %v3296_v39, %v3171_v11 }
0x1476   :  { %3190 = vst [vmem:[%s5082_s13 + $0x38] sm:$0xff] %v3180_v9 }
0x1477   :  { %3188 = vst [vmem:[%s5082_s13 + $0x28] sm:$0xff] %v3172_v24 }

</bundles_post_ra>
